<compile_context>
chip_gen: v7x
topology: tpu7x:2x2x1
jax: 0.10.0
libtpu: 0.0.40
codegen_flags: <defaults>
</compile_context>

<pallas_src>
import jax
import jax.numpy as jnp
from jax.experimental import pallas as pl
from jax.experimental.pallas import tpu as pltpu


# ---------------------------------------------------------------------------
# Architecture constants (LeNet-5 for SVHN: 3x32x32 input)
# ---------------------------------------------------------------------------
IMG_H = IMG_W = 32
C_IN = 3
K = 5
C1_OUT = 6
C1_OH = IMG_H - K + 1        # 28
C1_PH = C1_OH // 2           # 14
C2_OUT = 16
C2_OH = C1_PH - K + 1        # 10
C2_PH = C2_OH // 2           # 5
C3_OUT = 120
F4_OUT = 84
F5_OUT = 10


# ---------------------------------------------------------------------------
# One-time weight prep (plain JAX, outside the kernel / per-step path)
# ---------------------------------------------------------------------------

def _conv_banded(w_oihw, w_in):
    """Banded matrices M[di] such that conv2d == sum_di X[di:di+OH, :] @ M[di].

    Activations are laid out as X[h, w*Cin + ci]; conv output comes out as
    Y[oh, ow*Cout + co].  Returns an array of shape (KH, W_in*Cin, OW*Cout).
    """
    c_out, c_in, kh, kw = w_oihw.shape
    ow_n = w_in - kw + 1
    wt = jnp.transpose(w_oihw, (2, 3, 1, 0)).astype(jnp.float32)   # (KH,KW,Cin,Cout)
    win = jnp.arange(w_in)[:, None]
    ow = jnp.arange(ow_n)[None, :]
    dj = win - ow                                                  # (W_in, OW)
    valid = (dj >= 0) & (dj < kw)
    g = wt[:, jnp.clip(dj, 0, kw - 1)]                             # (KH,W_in,OW,Cin,Cout)
    g = jnp.where(valid[None, :, :, None, None], g, 0.0)
    g = jnp.transpose(g, (0, 1, 3, 2, 4))                          # (KH,W_in,Cin,OW,Cout)
    return g.reshape(kh, w_in * c_in, ow_n * c_out)


def _row_pool_sel(oh):
    """(2, OH//2, OH) 0/1 matrices selecting even / odd rows (for 2x2 pool)."""
    ph = oh // 2
    rows = jnp.arange(oh)[None, :]
    even = (rows == (2 * jnp.arange(ph))[:, None]).astype(jnp.float32)
    odd = (rows == (2 * jnp.arange(ph) + 1)[:, None]).astype(jnp.float32)
    return jnp.stack([even, odd])


def _col_pool_sel(ow, c):
    """(2, OW*C, (OW//2)*C) 0/1 matrices selecting even / odd width groups."""
    pw = ow // 2
    eye_c = jnp.eye(c, dtype=jnp.float32)
    sels = []
    for r in (0, 1):
        m = (jnp.arange(ow)[:, None] == (2 * jnp.arange(pw) + r)[None, :])
        sels.append(jnp.kron(m.astype(jnp.float32), eye_c))
    return jnp.stack(sels)


def prepare_params(params):
    """Transform PyTorch-layout parameters into the fused-kernel operands."""
    f32 = jnp.float32
    bf16 = jnp.bfloat16

    m1 = _conv_banded(params["c1_w"], IMG_W).astype(bf16)            # (5, 96, 168)
    b1 = jnp.tile(params["c1_b"], C1_OH).reshape(1, -1).astype(f32)  # (1, 168)
    p1 = _row_pool_sel(C1_OH)                                        # (2, 14, 28)
    s1 = _col_pool_sel(C1_OH, C1_OUT)                                # (2, 168, 84)

    # c2_1 / c2_2 fused on the N axis: lanes [0:160] branch1, [160:320] branch2
    m2 = jnp.concatenate([_conv_banded(params["c2_1_w"], C1_PH),
                          _conv_banded(params["c2_2_w"], C1_PH)],
                         axis=-1).astype(bf16)                       # (5, 84, 320)
    b2 = jnp.concatenate([jnp.tile(params["c2_1_b"], C2_OH),
                          jnp.tile(params["c2_2_b"], C2_OH)]).reshape(1, -1).astype(f32)
    p2 = _row_pool_sel(C2_OH)                                        # (2, 5, 10)
    s2h = _col_pool_sel(C2_OH, C2_OUT)                               # (2, 160, 80)
    s2 = jnp.stack([jnp.kron(jnp.eye(2, dtype=f32), s2h[r])          # block-diag per branch
                    for r in range(2)])                              # (2, 320, 160)

    m3 = _conv_banded(params["c3_w"], C2_PH).astype(bf16)            # (5, 80, 120)
    b3 = params["c3_b"].reshape(1, -1).astype(f32)                   # (1, 120)
    w4 = params["f4_w"].T.astype(f32)                                # (120, 84)
    b4 = params["f4_b"].reshape(1, -1).astype(f32)                   # (1, 84)
    w5 = params["f5_w"].T.astype(f32)                                # (84, 10)
    b5 = params["f5_b"].reshape(1, -1).astype(f32)                   # (1, 10)
    return (m1, b1, p1, s1, m2, b2, p2, s2, m3, b3, w4, b4, w5, b5)


# ---------------------------------------------------------------------------
# The fused Pallas kernel: one image per grid step, whole net in VMEM
# ---------------------------------------------------------------------------

def _lenet_fused_kernel(x_ref, m1_ref, b1_ref, p1_ref, s1_ref,
                        m2_ref, b2_ref, p2_ref, s2_ref,
                        m3_ref, b3_ref, w4_ref, b4_ref, w5_ref, b5_ref,
                        h4_ref, out_ref):
    f32 = jnp.float32
    bf16 = jnp.bfloat16

    xb = x_ref[0]                                                    # (32, 96) f32

    # ---- C1: conv(3->6, 5x5) + bias(in-accumulator) + ReLU ------------------
    acc1 = b1_ref[...] + jnp.dot(xb[0:C1_OH, :].astype(bf16), m1_ref[0],
                                 preferred_element_type=f32)         # (28, 168)
    for di in range(1, K):
        acc1 = acc1 + jnp.dot(xb[di:di + C1_OH, :].astype(bf16), m1_ref[di],
                              preferred_element_type=f32)
    z1 = jnp.maximum(acc1, 0.0)

    # ---- fused maxpool 2x2 (row-phase + lane-phase selection matmuls) -------
    zr1 = jnp.maximum(jnp.dot(p1_ref[0], z1, preferred_element_type=f32),
                      jnp.dot(p1_ref[1], z1, preferred_element_type=f32))
    x1 = jnp.maximum(jnp.dot(zr1, s1_ref[0], preferred_element_type=f32),
                     jnp.dot(zr1, s1_ref[1], preferred_element_type=f32))
    # x1: (14, 14*6) = (14, 84) with (w, c) on the lane axis

    # ---- C2_1 & C2_2 fused conv(6->16, 5x5) + ReLU + pool + residual --------
    acc2 = b2_ref[...] + jnp.dot(x1[0:C2_OH, :].astype(bf16), m2_ref[0],
                                 preferred_element_type=f32)         # (10, 320)
    for di in range(1, K):
        acc2 = acc2 + jnp.dot(x1[di:di + C2_OH, :].astype(bf16), m2_ref[di],
                              preferred_element_type=f32)
    z2 = jnp.maximum(acc2, 0.0)
    zr2 = jnp.maximum(jnp.dot(p2_ref[0], z2, preferred_element_type=f32),
                      jnp.dot(p2_ref[1], z2, preferred_element_type=f32))
    pooled2 = jnp.maximum(jnp.dot(zr2, s2_ref[0], preferred_element_type=f32),
                          jnp.dot(zr2, s2_ref[1], preferred_element_type=f32))
    half = C2_PH * C2_OUT                                            # 80
    x2 = pooled2[:, 0:half] + pooled2[:, half:2 * half]              # x += x1 (residual)

    # ---- C3: conv(16->120, 5x5) on 5x5 spatial + ReLU -> (1, 120) -----------
    acc3 = b3_ref[...]
    for di in range(K):
        acc3 = acc3 + jnp.dot(x2[di:di + 1, :].astype(bf16), m3_ref[di],
                              preferred_element_type=f32)
    z3 = jnp.maximum(acc3, 0.0)

    # ---- F4: Linear(120->84) + ReLU (f32 tail) -------------------------------
    h4 = jnp.maximum(jnp.dot(z3, w4_ref[...], preferred_element_type=f32)
                     + b4_ref[...], 0.0)                             # (1, 84)
    h4_ref[0] = h4

    # ---- F5: Linear(84->10) + LogSoftmax -------------------------------------
    logits = jnp.dot(h4, w5_ref[...], preferred_element_type=f32) + b5_ref[...]
    mx = jnp.max(logits, axis=-1, keepdims=True)
    ex = jnp.exp(logits - mx)
    out_ref[0] = (logits - mx) - jnp.log(jnp.sum(ex, axis=-1, keepdims=True))


# ---------------------------------------------------------------------------
# Forward wrapper
# ---------------------------------------------------------------------------

@jax.jit
def lenet5_svhn_forward(img_nchw, prep):
    batch = img_nchw.shape[0]
    # NCHW -> (B, H, W*Cin) with channels fastest on the lane axis.
    x3d = jnp.transpose(img_nchw.astype(jnp.float32), (0, 2, 3, 1)).reshape(
        batch, IMG_H, IMG_W * C_IN)

    vmem = pl.BlockSpec(memory_space=pltpu.MemorySpace.VMEM)

    h4_3d, logp_3d = pl.pallas_call(
        _lenet_fused_kernel,
        out_shape=(jax.ShapeDtypeStruct((batch, 1, F4_OUT), jnp.float32),
                   jax.ShapeDtypeStruct((batch, 1, F5_OUT), jnp.float32)),
        grid=(batch,),
        in_specs=[pl.BlockSpec((1, IMG_H, IMG_W * C_IN), lambda b: (b, 0, 0))]
                 + [vmem] * 14,
        out_specs=(pl.BlockSpec((1, 1, F4_OUT), lambda b: (b, 0, 0)),
                   pl.BlockSpec((1, 1, F5_OUT), lambda b: (b, 0, 0))),
        compiler_params=pltpu.CompilerParams(
            dimension_semantics=("parallel",),
            vmem_limit_bytes=32 * 1024 * 1024),
    )(x3d, *prep)

    h4 = h4_3d[:, 0, :]
    logp = logp_3d[:, 0, :]
    # PyTorch module returns (x, x, output) where x is the F4 activation.
    return h4, h4, logp


# ---------------------------------------------------------------------------
# Plain-JAX reference (for validation only)
# ---------------------------------------------------------------------------

def _reference_forward(img, params):
    def conv(x, w, b):
        y = jax.lax.conv_general_dilated(
            x, w, window_strides=(1, 1), padding="VALID",
            dimension_numbers=("NCHW", "OIHW", "NCHW"))
        return y + b.reshape(1, -1, 1, 1)

    def pool(x):
        return jax.lax.reduce_window(x, -jnp.inf, jax.lax.max,
                                     (1, 1, 2, 2), (1, 1, 2, 2), "VALID")

    x = pool(jax.nn.relu(conv(img, params["c1_w"], params["c1_b"])))
    x1 = pool(jax.nn.relu(conv(x, params["c2_1_w"], params["c2_1_b"])))
    x2 = pool(jax.nn.relu(conv(x, params["c2_2_w"], params["c2_2_b"])))
    x = x2 + x1
    x = jax.nn.relu(conv(x, params["c3_w"], params["c3_b"]))
    x = x.reshape(img.shape[0], -1)
    h4 = jax.nn.relu(x @ params["f4_w"].T + params["f4_b"])
    logp = jax.nn.log_softmax(h4 @ params["f5_w"].T + params["f5_b"], axis=-1)
    return h4, logp


# ---------------------------------------------------------------------------
# Deterministic parameter init (PyTorch-style uniform(-1/sqrt(fan_in), ...))
# ---------------------------------------------------------------------------

def init_params(key):
    def u(k, shape, fan_in):
        bound = 1.0 / float(fan_in) ** 0.5
        return jax.random.uniform(k, shape, jnp.float32, -bound, bound)

    ks = jax.random.split(key, 12)
    return {
        "c1_w":   u(ks[0],  (6, 3, 5, 5),    3 * 25),
        "c1_b":   u(ks[1],  (6,),            3 * 25),
        "c2_1_w": u(ks[2],  (16, 6, 5, 5),   6 * 25),
        "c2_1_b": u(ks[3],  (16,),           6 * 25),
        "c2_2_w": u(ks[4],  (16, 6, 5, 5),   6 * 25),
        "c2_2_b": u(ks[5],  (16,),           6 * 25),
        "c3_w":   u(ks[6],  (120, 16, 5, 5), 16 * 25),
        "c3_b":   u(ks[7],  (120,),          16 * 25),
        "f4_w":   u(ks[8],  (84, 120),       120),
        "f4_b":   u(ks[9],  (84,),           120),
        "f5_w":   u(ks[10], (10, 84),        84),
        "f5_b":   u(ks[11], (10,),           84),
    }


if __name__ == "__main__":
    key = jax.random.PRNGKey(0)
    k_img, k_par = jax.random.split(key)

    # The architecture requires 32x32 spatial input (conv stack reduces to 1x1).
    img = jax.random.normal(k_img, (2, 3, 32, 32), dtype=jnp.float32)  # NCHW
    params = init_params(k_par)
    prep = prepare_params(params)          # one-time weight transform

    h4_a, h4_b, logprobs = lenet5_svhn_forward(img, prep)
    jax.block_until_ready((h4_a, h4_b, logprobs))

    assert h4_a.shape == (2, 84) and h4_b.shape == (2, 84)
    assert logprobs.shape == (2, 10)
    # log-softmax rows should (approximately) exponentiate-sum to 1
    assert jnp.allclose(jnp.sum(jnp.exp(logprobs), axis=-1), 1.0, atol=1e-3)

    # Cross-check the fused kernel against a plain-JAX f32 reference.
    # Tolerance accounts for bf16 conv weights / conv-LHS casts (f32 accumulate).
    h4_exp, logp_exp = _reference_forward(img, params)
    assert jnp.allclose(h4_a, h4_exp, atol=3e-2, rtol=3e-2), \
        float(jnp.max(jnp.abs(h4_a - h4_exp)))
    assert jnp.allclose(logprobs, logp_exp, atol=3e-2, rtol=3e-2), \
        float(jnp.max(jnp.abs(logprobs - logp_exp)))

    print("KERNEL_OK")
</pallas_src>

<mosaic_0001>
module attributes {stable_mosaic.version = 11 : i64} {
  func.func @_lenet_fused_kernel(%arg0: i32, %arg1: memref<1x32x96xf32, #tpu.memory_space<vmem>>, %arg2: memref<5x96x168xbf16, #tpu.memory_space<vmem>>, %arg3: memref<1x168xf32, #tpu.memory_space<vmem>>, %arg4: memref<2x14x28xf32, #tpu.memory_space<vmem>>, %arg5: memref<2x168x84xf32, #tpu.memory_space<vmem>>, %arg6: memref<5x84x320xbf16, #tpu.memory_space<vmem>>, %arg7: memref<1x320xf32, #tpu.memory_space<vmem>>, %arg8: memref<2x5x10xf32, #tpu.memory_space<vmem>>, %arg9: memref<2x320x160xf32, #tpu.memory_space<vmem>>, %arg10: memref<5x80x120xbf16, #tpu.memory_space<vmem>>, %arg11: memref<1x120xf32, #tpu.memory_space<vmem>>, %arg12: memref<120x84xf32, #tpu.memory_space<vmem>>, %arg13: memref<1x84xf32, #tpu.memory_space<vmem>>, %arg14: memref<84x10xf32, #tpu.memory_space<vmem>>, %arg15: memref<1x10xf32, #tpu.memory_space<vmem>>, %arg16: memref<1x1x84xf32, #tpu.memory_space<vmem>>, %arg17: memref<1x1x10xf32, #tpu.memory_space<vmem>>) attributes {dimension_semantics = [#tpu.dimension_semantics<parallel>], iteration_bounds = array<i64: 2>, scalar_prefetch = 0 : i64, scratch_operands = 0 : i64, tpu.core_type = #tpu.core_type<tc>, window_params = [{transform_indices = @transform_0, window_bounds = array<i64: 1, 32, 96>}, {pipeline_mode = #tpu.pipeline_mode<synchronous>, transform_indices = @transform_1, window_bounds = array<i64: 5, 96, 168>}, {pipeline_mode = #tpu.pipeline_mode<synchronous>, transform_indices = @transform_2, window_bounds = array<i64: 1, 168>}, {pipeline_mode = #tpu.pipeline_mode<synchronous>, transform_indices = @transform_3, window_bounds = array<i64: 2, 14, 28>}, {pipeline_mode = #tpu.pipeline_mode<synchronous>, transform_indices = @transform_4, window_bounds = array<i64: 2, 168, 84>}, {pipeline_mode = #tpu.pipeline_mode<synchronous>, transform_indices = @transform_5, window_bounds = array<i64: 5, 84, 320>}, {pipeline_mode = #tpu.pipeline_mode<synchronous>, transform_indices = @transform_6, window_bounds = array<i64: 1, 320>}, {pipeline_mode = #tpu.pipeline_mode<synchronous>, transform_indices = @transform_7, window_bounds = array<i64: 2, 5, 10>}, {pipeline_mode = #tpu.pipeline_mode<synchronous>, transform_indices = @transform_8, window_bounds = array<i64: 2, 320, 160>}, {pipeline_mode = #tpu.pipeline_mode<synchronous>, transform_indices = @transform_9, window_bounds = array<i64: 5, 80, 120>}, {pipeline_mode = #tpu.pipeline_mode<synchronous>, transform_indices = @transform_10, window_bounds = array<i64: 1, 120>}, {pipeline_mode = #tpu.pipeline_mode<synchronous>, transform_indices = @transform_11, window_bounds = array<i64: 120, 84>}, {pipeline_mode = #tpu.pipeline_mode<synchronous>, transform_indices = @transform_12, window_bounds = array<i64: 1, 84>}, {pipeline_mode = #tpu.pipeline_mode<synchronous>, transform_indices = @transform_13, window_bounds = array<i64: 84, 10>}, {pipeline_mode = #tpu.pipeline_mode<synchronous>, transform_indices = @transform_14, window_bounds = array<i64: 1, 10>}, {transform_indices = @transform_15, window_bounds = array<i64: 1, 1, 84>}, {transform_indices = @transform_16, window_bounds = array<i64: 1, 1, 10>}]} {
    %c0 = arith.constant 0 : index
    %c0_0 = arith.constant 0 : index
    %c0_1 = arith.constant 0 : index
    %0 = vector.load %arg1[%c0, %c0_0, %c0_1] : memref<1x32x96xf32, #tpu.memory_space<vmem>>, vector<1x32x96xf32>
    %1 = vector.shape_cast %0 : vector<1x32x96xf32> to vector<32x96xf32>
    %c0_2 = arith.constant 0 : index
    %c0_3 = arith.constant 0 : index
    %2 = vector.load %arg3[%c0_2, %c0_3] : memref<1x168xf32, #tpu.memory_space<vmem>>, vector<1x168xf32>
    %3 = vector.extract_strided_slice %1 {offsets = [0, 0], sizes = [28, 96], strides = [1, 1]} : vector<32x96xf32> to vector<28x96xf32>
    %4 = arith.truncf %3 : vector<28x96xf32> to vector<28x96xbf16>
    %c0_4 = arith.constant 0 : index
    %c0_5 = arith.constant 0 : index
    %c0_6 = arith.constant 0 : index
    %5 = vector.load %arg2[%c0_4, %c0_5, %c0_6] : memref<5x96x168xbf16, #tpu.memory_space<vmem>>, vector<1x96x168xbf16>
    %6 = vector.shape_cast %5 : vector<1x96x168xbf16> to vector<96x168xbf16>
    %cst = arith.constant dense<0.000000e+00> : vector<28x168xf32>
    %7 = tpu.matmul %4, %6, %cst {dimension_numbers = #tpu.dot_dimension_numbers<[1], [0], [0], [1], [0, 0, 1, 1], [], []>} : vector<28x96xbf16>, vector<96x168xbf16>, vector<28x168xf32> -> vector<28x168xf32>
    %8 = vector.broadcast %2 : vector<1x168xf32> to vector<28x168xf32>
    %9 = arith.addf %8, %7 : vector<28x168xf32>
    %10 = vector.extract_strided_slice %1 {offsets = [1, 0], sizes = [28, 96], strides = [1, 1]} : vector<32x96xf32> to vector<28x96xf32>
    %11 = arith.truncf %10 : vector<28x96xf32> to vector<28x96xbf16>
    %c1 = arith.constant 1 : index
    %c0_7 = arith.constant 0 : index
    %c0_8 = arith.constant 0 : index
    %12 = vector.load %arg2[%c1, %c0_7, %c0_8] : memref<5x96x168xbf16, #tpu.memory_space<vmem>>, vector<1x96x168xbf16>
    %13 = vector.shape_cast %12 : vector<1x96x168xbf16> to vector<96x168xbf16>
    %cst_9 = arith.constant dense<0.000000e+00> : vector<28x168xf32>
    %14 = tpu.matmul %11, %13, %cst_9 {dimension_numbers = #tpu.dot_dimension_numbers<[1], [0], [0], [1], [0, 0, 1, 1], [], []>} : vector<28x96xbf16>, vector<96x168xbf16>, vector<28x168xf32> -> vector<28x168xf32>
    %15 = arith.addf %9, %14 : vector<28x168xf32>
    %16 = vector.extract_strided_slice %1 {offsets = [2, 0], sizes = [28, 96], strides = [1, 1]} : vector<32x96xf32> to vector<28x96xf32>
    %17 = arith.truncf %16 : vector<28x96xf32> to vector<28x96xbf16>
    %c2 = arith.constant 2 : index
    %c0_10 = arith.constant 0 : index
    %c0_11 = arith.constant 0 : index
    %18 = vector.load %arg2[%c2, %c0_10, %c0_11] : memref<5x96x168xbf16, #tpu.memory_space<vmem>>, vector<1x96x168xbf16>
    %19 = vector.shape_cast %18 : vector<1x96x168xbf16> to vector<96x168xbf16>
    %cst_12 = arith.constant dense<0.000000e+00> : vector<28x168xf32>
    %20 = tpu.matmul %17, %19, %cst_12 {dimension_numbers = #tpu.dot_dimension_numbers<[1], [0], [0], [1], [0, 0, 1, 1], [], []>} : vector<28x96xbf16>, vector<96x168xbf16>, vector<28x168xf32> -> vector<28x168xf32>
    %21 = arith.addf %15, %20 : vector<28x168xf32>
    %22 = vector.extract_strided_slice %1 {offsets = [3, 0], sizes = [28, 96], strides = [1, 1]} : vector<32x96xf32> to vector<28x96xf32>
    %23 = arith.truncf %22 : vector<28x96xf32> to vector<28x96xbf16>
    %c3 = arith.constant 3 : index
    %c0_13 = arith.constant 0 : index
    %c0_14 = arith.constant 0 : index
    %24 = vector.load %arg2[%c3, %c0_13, %c0_14] : memref<5x96x168xbf16, #tpu.memory_space<vmem>>, vector<1x96x168xbf16>
    %25 = vector.shape_cast %24 : vector<1x96x168xbf16> to vector<96x168xbf16>
    %cst_15 = arith.constant dense<0.000000e+00> : vector<28x168xf32>
    %26 = tpu.matmul %23, %25, %cst_15 {dimension_numbers = #tpu.dot_dimension_numbers<[1], [0], [0], [1], [0, 0, 1, 1], [], []>} : vector<28x96xbf16>, vector<96x168xbf16>, vector<28x168xf32> -> vector<28x168xf32>
    %27 = arith.addf %21, %26 : vector<28x168xf32>
    %28 = vector.extract_strided_slice %1 {offsets = [4, 0], sizes = [28, 96], strides = [1, 1]} : vector<32x96xf32> to vector<28x96xf32>
    %29 = arith.truncf %28 : vector<28x96xf32> to vector<28x96xbf16>
    %c4 = arith.constant 4 : index
    %c0_16 = arith.constant 0 : index
    %c0_17 = arith.constant 0 : index
    %30 = vector.load %arg2[%c4, %c0_16, %c0_17] : memref<5x96x168xbf16, #tpu.memory_space<vmem>>, vector<1x96x168xbf16>
    %31 = vector.shape_cast %30 : vector<1x96x168xbf16> to vector<96x168xbf16>
    %cst_18 = arith.constant dense<0.000000e+00> : vector<28x168xf32>
    %32 = tpu.matmul %29, %31, %cst_18 {dimension_numbers = #tpu.dot_dimension_numbers<[1], [0], [0], [1], [0, 0, 1, 1], [], []>} : vector<28x96xbf16>, vector<96x168xbf16>, vector<28x168xf32> -> vector<28x168xf32>
    %33 = arith.addf %27, %32 : vector<28x168xf32>
    %cst_19 = arith.constant 0.000000e+00 : f32
    %34 = vector.broadcast %cst_19 : f32 to vector<28x168xf32>
    %35 = arith.maximumf %33, %34 : vector<28x168xf32>
    %c0_20 = arith.constant 0 : index
    %c0_21 = arith.constant 0 : index
    %c0_22 = arith.constant 0 : index
    %36 = vector.load %arg4[%c0_20, %c0_21, %c0_22] : memref<2x14x28xf32, #tpu.memory_space<vmem>>, vector<1x14x28xf32>
    %37 = vector.shape_cast %36 : vector<1x14x28xf32> to vector<14x28xf32>
    %cst_23 = arith.constant dense<0.000000e+00> : vector<14x168xf32>
    %38 = tpu.matmul %37, %35, %cst_23 {dimension_numbers = #tpu.dot_dimension_numbers<[1], [0], [0], [1], [0, 0, 1, 1], [], []>} : vector<14x28xf32>, vector<28x168xf32>, vector<14x168xf32> -> vector<14x168xf32>
    %c1_24 = arith.constant 1 : index
    %c0_25 = arith.constant 0 : index
    %c0_26 = arith.constant 0 : index
    %39 = vector.load %arg4[%c1_24, %c0_25, %c0_26] : memref<2x14x28xf32, #tpu.memory_space<vmem>>, vector<1x14x28xf32>
    %40 = vector.shape_cast %39 : vector<1x14x28xf32> to vector<14x28xf32>
    %cst_27 = arith.constant dense<0.000000e+00> : vector<14x168xf32>
    %41 = tpu.matmul %40, %35, %cst_27 {dimension_numbers = #tpu.dot_dimension_numbers<[1], [0], [0], [1], [0, 0, 1, 1], [], []>} : vector<14x28xf32>, vector<28x168xf32>, vector<14x168xf32> -> vector<14x168xf32>
    %42 = arith.maximumf %38, %41 : vector<14x168xf32>
    %c0_28 = arith.constant 0 : index
    %c0_29 = arith.constant 0 : index
    %c0_30 = arith.constant 0 : index
    %43 = vector.load %arg5[%c0_28, %c0_29, %c0_30] : memref<2x168x84xf32, #tpu.memory_space<vmem>>, vector<1x168x84xf32>
    %44 = vector.shape_cast %43 : vector<1x168x84xf32> to vector<168x84xf32>
    %cst_31 = arith.constant dense<0.000000e+00> : vector<14x84xf32>
    %45 = tpu.matmul %42, %44, %cst_31 {dimension_numbers = #tpu.dot_dimension_numbers<[1], [0], [0], [1], [0, 0, 1, 1], [], []>} : vector<14x168xf32>, vector<168x84xf32>, vector<14x84xf32> -> vector<14x84xf32>
    %c1_32 = arith.constant 1 : index
    %c0_33 = arith.constant 0 : index
    %c0_34 = arith.constant 0 : index
    %46 = vector.load %arg5[%c1_32, %c0_33, %c0_34] : memref<2x168x84xf32, #tpu.memory_space<vmem>>, vector<1x168x84xf32>
    %47 = vector.shape_cast %46 : vector<1x168x84xf32> to vector<168x84xf32>
    %cst_35 = arith.constant dense<0.000000e+00> : vector<14x84xf32>
    %48 = tpu.matmul %42, %47, %cst_35 {dimension_numbers = #tpu.dot_dimension_numbers<[1], [0], [0], [1], [0, 0, 1, 1], [], []>} : vector<14x168xf32>, vector<168x84xf32>, vector<14x84xf32> -> vector<14x84xf32>
    %49 = arith.maximumf %45, %48 : vector<14x84xf32>
    %c0_36 = arith.constant 0 : index
    %c0_37 = arith.constant 0 : index
    %50 = vector.load %arg7[%c0_36, %c0_37] : memref<1x320xf32, #tpu.memory_space<vmem>>, vector<1x320xf32>
    %51 = vector.extract_strided_slice %49 {offsets = [0, 0], sizes = [10, 84], strides = [1, 1]} : vector<14x84xf32> to vector<10x84xf32>
    %52 = arith.truncf %51 : vector<10x84xf32> to vector<10x84xbf16>
    %c0_38 = arith.constant 0 : index
    %c0_39 = arith.constant 0 : index
    %c0_40 = arith.constant 0 : index
    %53 = vector.load %arg6[%c0_38, %c0_39, %c0_40] : memref<5x84x320xbf16, #tpu.memory_space<vmem>>, vector<1x84x320xbf16>
    %54 = vector.shape_cast %53 : vector<1x84x320xbf16> to vector<84x320xbf16>
    %cst_41 = arith.constant dense<0.000000e+00> : vector<10x320xf32>
    %55 = tpu.matmul %52, %54, %cst_41 {dimension_numbers = #tpu.dot_dimension_numbers<[1], [0], [0], [1], [0, 0, 1, 1], [], []>} : vector<10x84xbf16>, vector<84x320xbf16>, vector<10x320xf32> -> vector<10x320xf32>
    %56 = vector.broadcast %50 : vector<1x320xf32> to vector<10x320xf32>
    %57 = arith.addf %56, %55 : vector<10x320xf32>
    %58 = vector.extract_strided_slice %49 {offsets = [1, 0], sizes = [10, 84], strides = [1, 1]} : vector<14x84xf32> to vector<10x84xf32>
    %59 = arith.truncf %58 : vector<10x84xf32> to vector<10x84xbf16>
    %c1_42 = arith.constant 1 : index
    %c0_43 = arith.constant 0 : index
    %c0_44 = arith.constant 0 : index
    %60 = vector.load %arg6[%c1_42, %c0_43, %c0_44] : memref<5x84x320xbf16, #tpu.memory_space<vmem>>, vector<1x84x320xbf16>
    %61 = vector.shape_cast %60 : vector<1x84x320xbf16> to vector<84x320xbf16>
    %cst_45 = arith.constant dense<0.000000e+00> : vector<10x320xf32>
    %62 = tpu.matmul %59, %61, %cst_45 {dimension_numbers = #tpu.dot_dimension_numbers<[1], [0], [0], [1], [0, 0, 1, 1], [], []>} : vector<10x84xbf16>, vector<84x320xbf16>, vector<10x320xf32> -> vector<10x320xf32>
    %63 = arith.addf %57, %62 : vector<10x320xf32>
    %64 = vector.extract_strided_slice %49 {offsets = [2, 0], sizes = [10, 84], strides = [1, 1]} : vector<14x84xf32> to vector<10x84xf32>
    %65 = arith.truncf %64 : vector<10x84xf32> to vector<10x84xbf16>
    %c2_46 = arith.constant 2 : index
    %c0_47 = arith.constant 0 : index
    %c0_48 = arith.constant 0 : index
    %66 = vector.load %arg6[%c2_46, %c0_47, %c0_48] : memref<5x84x320xbf16, #tpu.memory_space<vmem>>, vector<1x84x320xbf16>
    %67 = vector.shape_cast %66 : vector<1x84x320xbf16> to vector<84x320xbf16>
    %cst_49 = arith.constant dense<0.000000e+00> : vector<10x320xf32>
    %68 = tpu.matmul %65, %67, %cst_49 {dimension_numbers = #tpu.dot_dimension_numbers<[1], [0], [0], [1], [0, 0, 1, 1], [], []>} : vector<10x84xbf16>, vector<84x320xbf16>, vector<10x320xf32> -> vector<10x320xf32>
    %69 = arith.addf %63, %68 : vector<10x320xf32>
    %70 = vector.extract_strided_slice %49 {offsets = [3, 0], sizes = [10, 84], strides = [1, 1]} : vector<14x84xf32> to vector<10x84xf32>
    %71 = arith.truncf %70 : vector<10x84xf32> to vector<10x84xbf16>
    %c3_50 = arith.constant 3 : index
    %c0_51 = arith.constant 0 : index
    %c0_52 = arith.constant 0 : index
    %72 = vector.load %arg6[%c3_50, %c0_51, %c0_52] : memref<5x84x320xbf16, #tpu.memory_space<vmem>>, vector<1x84x320xbf16>
    %73 = vector.shape_cast %72 : vector<1x84x320xbf16> to vector<84x320xbf16>
    %cst_53 = arith.constant dense<0.000000e+00> : vector<10x320xf32>
    %74 = tpu.matmul %71, %73, %cst_53 {dimension_numbers = #tpu.dot_dimension_numbers<[1], [0], [0], [1], [0, 0, 1, 1], [], []>} : vector<10x84xbf16>, vector<84x320xbf16>, vector<10x320xf32> -> vector<10x320xf32>
    %75 = arith.addf %69, %74 : vector<10x320xf32>
    %76 = vector.extract_strided_slice %49 {offsets = [4, 0], sizes = [10, 84], strides = [1, 1]} : vector<14x84xf32> to vector<10x84xf32>
    %77 = arith.truncf %76 : vector<10x84xf32> to vector<10x84xbf16>
    %c4_54 = arith.constant 4 : index
    %c0_55 = arith.constant 0 : index
    %c0_56 = arith.constant 0 : index
    %78 = vector.load %arg6[%c4_54, %c0_55, %c0_56] : memref<5x84x320xbf16, #tpu.memory_space<vmem>>, vector<1x84x320xbf16>
    %79 = vector.shape_cast %78 : vector<1x84x320xbf16> to vector<84x320xbf16>
    %cst_57 = arith.constant dense<0.000000e+00> : vector<10x320xf32>
    %80 = tpu.matmul %77, %79, %cst_57 {dimension_numbers = #tpu.dot_dimension_numbers<[1], [0], [0], [1], [0, 0, 1, 1], [], []>} : vector<10x84xbf16>, vector<84x320xbf16>, vector<10x320xf32> -> vector<10x320xf32>
    %81 = arith.addf %75, %80 : vector<10x320xf32>
    %cst_58 = arith.constant 0.000000e+00 : f32
    %82 = vector.broadcast %cst_58 : f32 to vector<10x320xf32>
    %83 = arith.maximumf %81, %82 : vector<10x320xf32>
    %c0_59 = arith.constant 0 : index
    %c0_60 = arith.constant 0 : index
    %c0_61 = arith.constant 0 : index
    %84 = vector.load %arg8[%c0_59, %c0_60, %c0_61] : memref<2x5x10xf32, #tpu.memory_space<vmem>>, vector<1x5x10xf32>
    %85 = vector.shape_cast %84 : vector<1x5x10xf32> to vector<5x10xf32>
    %cst_62 = arith.constant dense<0.000000e+00> : vector<5x320xf32>
    %86 = tpu.matmul %85, %83, %cst_62 {dimension_numbers = #tpu.dot_dimension_numbers<[1], [0], [0], [1], [0, 0, 1, 1], [], []>} : vector<5x10xf32>, vector<10x320xf32>, vector<5x320xf32> -> vector<5x320xf32>
    %c1_63 = arith.constant 1 : index
    %c0_64 = arith.constant 0 : index
    %c0_65 = arith.constant 0 : index
    %87 = vector.load %arg8[%c1_63, %c0_64, %c0_65] : memref<2x5x10xf32, #tpu.memory_space<vmem>>, vector<1x5x10xf32>
    %88 = vector.shape_cast %87 : vector<1x5x10xf32> to vector<5x10xf32>
    %cst_66 = arith.constant dense<0.000000e+00> : vector<5x320xf32>
    %89 = tpu.matmul %88, %83, %cst_66 {dimension_numbers = #tpu.dot_dimension_numbers<[1], [0], [0], [1], [0, 0, 1, 1], [], []>} : vector<5x10xf32>, vector<10x320xf32>, vector<5x320xf32> -> vector<5x320xf32>
    %90 = arith.maximumf %86, %89 : vector<5x320xf32>
    %c0_67 = arith.constant 0 : index
    %c0_68 = arith.constant 0 : index
    %c0_69 = arith.constant 0 : index
    %91 = vector.load %arg9[%c0_67, %c0_68, %c0_69] : memref<2x320x160xf32, #tpu.memory_space<vmem>>, vector<1x320x160xf32>
    %92 = vector.shape_cast %91 : vector<1x320x160xf32> to vector<320x160xf32>
    %cst_70 = arith.constant dense<0.000000e+00> : vector<5x160xf32>
    %93 = tpu.matmul %90, %92, %cst_70 {dimension_numbers = #tpu.dot_dimension_numbers<[1], [0], [0], [1], [0, 0, 1, 1], [], []>} : vector<5x320xf32>, vector<320x160xf32>, vector<5x160xf32> -> vector<5x160xf32>
    %c1_71 = arith.constant 1 : index
    %c0_72 = arith.constant 0 : index
    %c0_73 = arith.constant 0 : index
    %94 = vector.load %arg9[%c1_71, %c0_72, %c0_73] : memref<2x320x160xf32, #tpu.memory_space<vmem>>, vector<1x320x160xf32>
    %95 = vector.shape_cast %94 : vector<1x320x160xf32> to vector<320x160xf32>
    %cst_74 = arith.constant dense<0.000000e+00> : vector<5x160xf32>
    %96 = tpu.matmul %90, %95, %cst_74 {dimension_numbers = #tpu.dot_dimension_numbers<[1], [0], [0], [1], [0, 0, 1, 1], [], []>} : vector<5x320xf32>, vector<320x160xf32>, vector<5x160xf32> -> vector<5x160xf32>
    %97 = arith.maximumf %93, %96 : vector<5x160xf32>
    %98 = vector.extract_strided_slice %97 {offsets = [0, 0], sizes = [5, 80], strides = [1, 1]} : vector<5x160xf32> to vector<5x80xf32>
    %99 = vector.extract_strided_slice %97 {offsets = [0, 80], sizes = [5, 80], strides = [1, 1]} : vector<5x160xf32> to vector<5x80xf32>
    %100 = arith.addf %98, %99 : vector<5x80xf32>
    %c0_75 = arith.constant 0 : index
    %c0_76 = arith.constant 0 : index
    %101 = vector.load %arg11[%c0_75, %c0_76] : memref<1x120xf32, #tpu.memory_space<vmem>>, vector<1x120xf32>
    %102 = vector.extract_strided_slice %100 {offsets = [0, 0], sizes = [1, 80], strides = [1, 1]} : vector<5x80xf32> to vector<1x80xf32>
    %103 = arith.truncf %102 : vector<1x80xf32> to vector<1x80xbf16>
    %c0_77 = arith.constant 0 : index
    %c0_78 = arith.constant 0 : index
    %c0_79 = arith.constant 0 : index
    %104 = vector.load %arg10[%c0_77, %c0_78, %c0_79] : memref<5x80x120xbf16, #tpu.memory_space<vmem>>, vector<1x80x120xbf16>
    %105 = vector.shape_cast %104 : vector<1x80x120xbf16> to vector<80x120xbf16>
    %cst_80 = arith.constant dense<0.000000e+00> : vector<1x120xf32>
    %106 = tpu.matmul %103, %105, %cst_80 {dimension_numbers = #tpu.dot_dimension_numbers<[1], [0], [0], [1], [0, 0, 1, 1], [], []>} : vector<1x80xbf16>, vector<80x120xbf16>, vector<1x120xf32> -> vector<1x120xf32>
    %107 = arith.addf %101, %106 : vector<1x120xf32>
    %108 = vector.extract_strided_slice %100 {offsets = [1, 0], sizes = [1, 80], strides = [1, 1]} : vector<5x80xf32> to vector<1x80xf32>
    %109 = arith.truncf %108 : vector<1x80xf32> to vector<1x80xbf16>
    %c1_81 = arith.constant 1 : index
    %c0_82 = arith.constant 0 : index
    %c0_83 = arith.constant 0 : index
    %110 = vector.load %arg10[%c1_81, %c0_82, %c0_83] : memref<5x80x120xbf16, #tpu.memory_space<vmem>>, vector<1x80x120xbf16>
    %111 = vector.shape_cast %110 : vector<1x80x120xbf16> to vector<80x120xbf16>
    %cst_84 = arith.constant dense<0.000000e+00> : vector<1x120xf32>
    %112 = tpu.matmul %109, %111, %cst_84 {dimension_numbers = #tpu.dot_dimension_numbers<[1], [0], [0], [1], [0, 0, 1, 1], [], []>} : vector<1x80xbf16>, vector<80x120xbf16>, vector<1x120xf32> -> vector<1x120xf32>
    %113 = arith.addf %107, %112 : vector<1x120xf32>
    %114 = vector.extract_strided_slice %100 {offsets = [2, 0], sizes = [1, 80], strides = [1, 1]} : vector<5x80xf32> to vector<1x80xf32>
    %115 = arith.truncf %114 : vector<1x80xf32> to vector<1x80xbf16>
    %c2_85 = arith.constant 2 : index
    %c0_86 = arith.constant 0 : index
    %c0_87 = arith.constant 0 : index
    %116 = vector.load %arg10[%c2_85, %c0_86, %c0_87] : memref<5x80x120xbf16, #tpu.memory_space<vmem>>, vector<1x80x120xbf16>
    %117 = vector.shape_cast %116 : vector<1x80x120xbf16> to vector<80x120xbf16>
    %cst_88 = arith.constant dense<0.000000e+00> : vector<1x120xf32>
    %118 = tpu.matmul %115, %117, %cst_88 {dimension_numbers = #tpu.dot_dimension_numbers<[1], [0], [0], [1], [0, 0, 1, 1], [], []>} : vector<1x80xbf16>, vector<80x120xbf16>, vector<1x120xf32> -> vector<1x120xf32>
    %119 = arith.addf %113, %118 : vector<1x120xf32>
    %120 = vector.extract_strided_slice %100 {offsets = [3, 0], sizes = [1, 80], strides = [1, 1]} : vector<5x80xf32> to vector<1x80xf32>
    %121 = arith.truncf %120 : vector<1x80xf32> to vector<1x80xbf16>
    %c3_89 = arith.constant 3 : index
    %c0_90 = arith.constant 0 : index
    %c0_91 = arith.constant 0 : index
    %122 = vector.load %arg10[%c3_89, %c0_90, %c0_91] : memref<5x80x120xbf16, #tpu.memory_space<vmem>>, vector<1x80x120xbf16>
    %123 = vector.shape_cast %122 : vector<1x80x120xbf16> to vector<80x120xbf16>
    %cst_92 = arith.constant dense<0.000000e+00> : vector<1x120xf32>
    %124 = tpu.matmul %121, %123, %cst_92 {dimension_numbers = #tpu.dot_dimension_numbers<[1], [0], [0], [1], [0, 0, 1, 1], [], []>} : vector<1x80xbf16>, vector<80x120xbf16>, vector<1x120xf32> -> vector<1x120xf32>
    %125 = arith.addf %119, %124 : vector<1x120xf32>
    %126 = vector.extract_strided_slice %100 {offsets = [4, 0], sizes = [1, 80], strides = [1, 1]} : vector<5x80xf32> to vector<1x80xf32>
    %127 = arith.truncf %126 : vector<1x80xf32> to vector<1x80xbf16>
    %c4_93 = arith.constant 4 : index
    %c0_94 = arith.constant 0 : index
    %c0_95 = arith.constant 0 : index
    %128 = vector.load %arg10[%c4_93, %c0_94, %c0_95] : memref<5x80x120xbf16, #tpu.memory_space<vmem>>, vector<1x80x120xbf16>
    %129 = vector.shape_cast %128 : vector<1x80x120xbf16> to vector<80x120xbf16>
    %cst_96 = arith.constant dense<0.000000e+00> : vector<1x120xf32>
    %130 = tpu.matmul %127, %129, %cst_96 {dimension_numbers = #tpu.dot_dimension_numbers<[1], [0], [0], [1], [0, 0, 1, 1], [], []>} : vector<1x80xbf16>, vector<80x120xbf16>, vector<1x120xf32> -> vector<1x120xf32>
    %131 = arith.addf %125, %130 : vector<1x120xf32>
    %cst_97 = arith.constant 0.000000e+00 : f32
    %132 = vector.broadcast %cst_97 : f32 to vector<1x120xf32>
    %133 = arith.maximumf %131, %132 : vector<1x120xf32>
    %c0_98 = arith.constant 0 : index
    %c0_99 = arith.constant 0 : index
    %134 = vector.load %arg12[%c0_98, %c0_99] : memref<120x84xf32, #tpu.memory_space<vmem>>, vector<120x84xf32>
    %cst_100 = arith.constant dense<0.000000e+00> : vector<1x84xf32>
    %135 = tpu.matmul %133, %134, %cst_100 {dimension_numbers = #tpu.dot_dimension_numbers<[1], [0], [0], [1], [0, 0, 1, 1], [], []>} : vector<1x120xf32>, vector<120x84xf32>, vector<1x84xf32> -> vector<1x84xf32>
    %c0_101 = arith.constant 0 : index
    %c0_102 = arith.constant 0 : index
    %136 = vector.load %arg13[%c0_101, %c0_102] : memref<1x84xf32, #tpu.memory_space<vmem>>, vector<1x84xf32>
    %137 = arith.addf %135, %136 : vector<1x84xf32>
    %cst_103 = arith.constant 0.000000e+00 : f32
    %138 = vector.broadcast %cst_103 : f32 to vector<1x84xf32>
    %139 = arith.maximumf %137, %138 : vector<1x84xf32>
    %c0_104 = arith.constant 0 : index
    %c0_105 = arith.constant 0 : index
    %c0_106 = arith.constant 0 : index
    %140 = vector.load %arg16[%c0_104, %c0_105, %c0_106] : memref<1x1x84xf32, #tpu.memory_space<vmem>>, vector<1x1x84xf32>
    %141 = vector.shape_cast %140 : vector<1x1x84xf32> to vector<1x84xf32>
    %142 = vector.shape_cast %139 : vector<1x84xf32> to vector<1x1x84xf32>
    tpu.vector_store %arg16[%c0_104, %c0_105, %c0_106], %142 {strides = array<i32>} : memref<1x1x84xf32, #tpu.memory_space<vmem>>, vector<1x1x84xf32>,
    %c0_107 = arith.constant 0 : index
    %c0_108 = arith.constant 0 : index
    %143 = vector.load %arg14[%c0_107, %c0_108] : memref<84x10xf32, #tpu.memory_space<vmem>>, vector<84x10xf32>
    %cst_109 = arith.constant dense<0.000000e+00> : vector<1x10xf32>
    %144 = tpu.matmul %139, %143, %cst_109 {dimension_numbers = #tpu.dot_dimension_numbers<[1], [0], [0], [1], [0, 0, 1, 1], [], []>} : vector<1x84xf32>, vector<84x10xf32>, vector<1x10xf32> -> vector<1x10xf32>
    %c0_110 = arith.constant 0 : index
    %c0_111 = arith.constant 0 : index
    %145 = vector.load %arg15[%c0_110, %c0_111] : memref<1x10xf32, #tpu.memory_space<vmem>>, vector<1x10xf32>
    %146 = arith.addf %144, %145 : vector<1x10xf32>
    %cst_112 = arith.constant dense<0xFF800000> : vector<1xf32>
    %147 = vector.multi_reduction <maximumf>, %146, %cst_112 [1] : vector<1x10xf32> to vector<1xf32>
    %148 = vector.shape_cast %147 : vector<1xf32> to vector<1x1xf32>
    %149 = vector.broadcast %148 : vector<1x1xf32> to vector<1x10xf32>
    %150 = arith.subf %146, %149 : vector<1x10xf32>
    %151 = math.exp %150 : vector<1x10xf32>
    %152 = vector.broadcast %148 : vector<1x1xf32> to vector<1x10xf32>
    %153 = arith.subf %146, %152 : vector<1x10xf32>
    %cst_113 = arith.constant dense<0.000000e+00> : vector<1xf32>
    %154 = vector.multi_reduction <add>, %151, %cst_113 [1] : vector<1x10xf32> to vector<1xf32>
    %155 = vector.shape_cast %154 : vector<1xf32> to vector<1x1xf32>
    %156 = math.log %155 : vector<1x1xf32>
    %157 = vector.broadcast %156 : vector<1x1xf32> to vector<1x10xf32>
    %158 = arith.subf %153, %157 : vector<1x10xf32>
    %c0_114 = arith.constant 0 : index
    %c0_115 = arith.constant 0 : index
    %c0_116 = arith.constant 0 : index
    %159 = vector.load %arg17[%c0_114, %c0_115, %c0_116] : memref<1x1x10xf32, #tpu.memory_space<vmem>>, vector<1x1x10xf32>
    %160 = vector.shape_cast %159 : vector<1x1x10xf32> to vector<1x10xf32>
    %161 = vector.shape_cast %158 : vector<1x10xf32> to vector<1x1x10xf32>
    tpu.vector_store %arg17[%c0_114, %c0_115, %c0_116], %161 {strides = array<i32>} : memref<1x1x10xf32, #tpu.memory_space<vmem>>, vector<1x1x10xf32>,
    return
  }
  func.func @transform_0(%arg0: i32) -> (i32, i32, i32) {
    %c0_i32 = arith.constant 0 : i32
    %c0_i32_0 = arith.constant 0 : i32
    %c0_i32_1 = arith.constant 0 : i32
    return %arg0, %c0_i32, %c0_i32_0 : i32, i32, i32
  }
  func.func @transform_1(%arg0: i32) -> (i32, i32, i32) {
    %c0_i32 = arith.constant 0 : i32
    %c0_i32_0 = arith.constant 0 : i32
    %c0_i32_1 = arith.constant 0 : i32
    %c0_i32_2 = arith.constant 0 : i32
    return %c0_i32, %c0_i32_0, %c0_i32_1 : i32, i32, i32
  }
  func.func @transform_2(%arg0: i32) -> (i32, i32) {
    %c0_i32 = arith.constant 0 : i32
    %c0_i32_0 = arith.constant 0 : i32
    %c0_i32_1 = arith.constant 0 : i32
    return %c0_i32, %c0_i32_0 : i32, i32
  }
  func.func @transform_3(%arg0: i32) -> (i32, i32, i32) {
    %c0_i32 = arith.constant 0 : i32
    %c0_i32_0 = arith.constant 0 : i32
    %c0_i32_1 = arith.constant 0 : i32
    %c0_i32_2 = arith.constant 0 : i32
    return %c0_i32, %c0_i32_0, %c0_i32_1 : i32, i32, i32
  }
  func.func @transform_4(%arg0: i32) -> (i32, i32, i32) {
    %c0_i32 = arith.constant 0 : i32
    %c0_i32_0 = arith.constant 0 : i32
    %c0_i32_1 = arith.constant 0 : i32
    %c0_i32_2 = arith.constant 0 : i32
    return %c0_i32, %c0_i32_0, %c0_i32_1 : i32, i32, i32
  }
  func.func @transform_5(%arg0: i32) -> (i32, i32, i32) {
    %c0_i32 = arith.constant 0 : i32
    %c0_i32_0 = arith.constant 0 : i32
    %c0_i32_1 = arith.constant 0 : i32
    %c0_i32_2 = arith.constant 0 : i32
    return %c0_i32, %c0_i32_0, %c0_i32_1 : i32, i32, i32
  }
  func.func @transform_6(%arg0: i32) -> (i32, i32) {
    %c0_i32 = arith.constant 0 : i32
    %c0_i32_0 = arith.constant 0 : i32
    %c0_i32_1 = arith.constant 0 : i32
    return %c0_i32, %c0_i32_0 : i32, i32
  }
  func.func @transform_7(%arg0: i32) -> (i32, i32, i32) {
    %c0_i32 = arith.constant 0 : i32
    %c0_i32_0 = arith.constant 0 : i32
    %c0_i32_1 = arith.constant 0 : i32
    %c0_i32_2 = arith.constant 0 : i32
    return %c0_i32, %c0_i32_0, %c0_i32_1 : i32, i32, i32
  }
  func.func @transform_8(%arg0: i32) -> (i32, i32, i32) {
    %c0_i32 = arith.constant 0 : i32
    %c0_i32_0 = arith.constant 0 : i32
    %c0_i32_1 = arith.constant 0 : i32
    %c0_i32_2 = arith.constant 0 : i32
    return %c0_i32, %c0_i32_0, %c0_i32_1 : i32, i32, i32
  }
  func.func @transform_9(%arg0: i32) -> (i32, i32, i32) {
    %c0_i32 = arith.constant 0 : i32
    %c0_i32_0 = arith.constant 0 : i32
    %c0_i32_1 = arith.constant 0 : i32
    %c0_i32_2 = arith.constant 0 : i32
    return %c0_i32, %c0_i32_0, %c0_i32_1 : i32, i32, i32
  }
  func.func @transform_10(%arg0: i32) -> (i32, i32) {
    %c0_i32 = arith.constant 0 : i32
    %c0_i32_0 = arith.constant 0 : i32
    %c0_i32_1 = arith.constant 0 : i32
    return %c0_i32, %c0_i32_0 : i32, i32
  }
  func.func @transform_11(%arg0: i32) -> (i32, i32) {
    %c0_i32 = arith.constant 0 : i32
    %c0_i32_0 = arith.constant 0 : i32
    %c0_i32_1 = arith.constant 0 : i32
    return %c0_i32, %c0_i32_0 : i32, i32
  }
  func.func @transform_12(%arg0: i32) -> (i32, i32) {
    %c0_i32 = arith.constant 0 : i32
    %c0_i32_0 = arith.constant 0 : i32
    %c0_i32_1 = arith.constant 0 : i32
    return %c0_i32, %c0_i32_0 : i32, i32
  }
  func.func @transform_13(%arg0: i32) -> (i32, i32) {
    %c0_i32 = arith.constant 0 : i32
    %c0_i32_0 = arith.constant 0 : i32
    %c0_i32_1 = arith.constant 0 : i32
    return %c0_i32, %c0_i32_0 : i32, i32
  }
  func.func @transform_14(%arg0: i32) -> (i32, i32) {
    %c0_i32 = arith.constant 0 : i32
    %c0_i32_0 = arith.constant 0 : i32
    %c0_i32_1 = arith.constant 0 : i32
    return %c0_i32, %c0_i32_0 : i32, i32
  }
  func.func @transform_15(%arg0: i32) -> (i32, i32, i32) {
    %c0_i32 = arith.constant 0 : i32
    %c0_i32_0 = arith.constant 0 : i32
    %c0_i32_1 = arith.constant 0 : i32
    return %arg0, %c0_i32, %c0_i32_0 : i32, i32, i32
  }
  func.func @transform_16(%arg0: i32) -> (i32, i32, i32) {
    %c0_i32 = arith.constant 0 : i32
    %c0_i32_0 = arith.constant 0 : i32
    %c0_i32_1 = arith.constant 0 : i32
    return %arg0, %c0_i32, %c0_i32_0 : i32, i32, i32
  }
}

</mosaic_0001>

<bundles_post_ra>
// kernel: lenet5_svhn_forward.1
= control target key start
LH: loop header
LB: loop body
LE: loop exit
PB: predicated region body
PF: predicated region fallthrough
CT: control target
= control target key end

     0   :  { %s7561_s0 = inlined_call_operand.vmem [shape: f32[2,32,96], index: 0, kind: input, shape index: {}]   ;;  %s7562_s1 = inlined_call_operand.vmem [shape: bf16[5,96,168], index: 1, kind: input, shape index: {}]   ;;  %s7563_s2 = inlined_call_operand.vmem [shape: f32[1,168], index: 2, kind: input, shape index: {}]   ;;  %s7564_s3 = inlined_call_operand.vmem [shape: f32[2,14,28], index: 3, kind: input, shape index: {}]   ;;  %s7565_s4 = inlined_call_operand.vmem [shape: f32[2,168,84], index: 4, kind: input, shape index: {}]   ;;  %s7566_s5 = inlined_call_operand.vmem [shape: bf16[5,84,320], index: 5, kind: input, shape index: {}]   ;;  %s7567_s6 = inlined_call_operand.vmem [shape: f32[1,320], index: 6, kind: input, shape index: {}]   ;;  %s7568_s7 = inlined_call_operand.vmem [shape: f32[2,5,10], index: 7, kind: input, shape index: {}]   ;;  %s7569_s8 = inlined_call_operand.vmem [shape: f32[2,320,160], index: 8, kind: input, shape index: {}]   ;;  %s7570_s9 = inlined_call_operand.vmem [shape: bf16[5,80,120], index: 9, kind: input, shape index: {}]   ;;  %s7571_s10 = inlined_call_operand.vmem [shape: f32[1,120], index: 10, kind: input, shape index: {}]   ;;  %s7572_s11 = inlined_call_operand.vmem [shape: f32[120,84], index: 11, kind: input, shape index: {}]   ;;  %s7573_s12 = inlined_call_operand.vmem [shape: f32[1,84], index: 12, kind: input, shape index: {}]   ;;  %s7574_s13 = inlined_call_operand.vmem [shape: f32[84,10], index: 13, kind: input, shape index: {}]   ;;  %s7575_s14 = inlined_call_operand.vmem [shape: f32[1,10], index: 14, kind: input, shape index: {}]   ;;  %s7576_s15 = inlined_call_operand.vmem [shape: f32[2,1,84], index: 15, kind: output, shape index: {0}]   ;;  %s7577_s16 = inlined_call_operand.hbm [shape: f32[2,1,10], index: 16, kind: output, shape index: {1}]  }
   0x1   :  { %7587 = sst [smem:[#allocation12_spill]] %s7561_s0 }
   0x2   :  { %7588 = sst [smem:[#allocation13_spill]] %s7577_s16 }
   0x3   :  { %22 = vsyncpa [#allocation3], 0 }
   0x4   :  { %24 = vsyncpa [#allocation3 + $0x1], 0  ;;  %s5932_s21 = smov 0   ;;  %s5934_s22 = smov 0  }
   0x5   :  { %s5936_s23 = smov 0   ;;  %s5938_s24 = smov 0  }
   0x6 LB: > { %7589 = sst [smem:[#allocation5_spill]] %s5826_s21  ;;  %s5953_s25 = sadd.s32 4294967295, %s5838_s24   ;;  %s5838_s24 = sphi %s5938_s24, %s7606_s24   ;;  %s5834_s23 = sphi %s5936_s23, %s7608_s23   ;;  %s5830_s22 = sphi %s5934_s22, %s7610_s22   ;;  %s5826_s21 = sphi %s5932_s21, %s7609_s21  }
   0x7   : > { %7590 = sst [smem:[#allocation6_spill]] %s5834_s23  ;;  %s4261_s26 = sadd.s32 4294967294, %s5838_s24  }
   0x8   : > { %7591 = sst [smem:[#allocation7_spill]] %s5838_s24  ;;  %s5957_s27 = sadd.s32 1, %s5838_s24  }
   0x9   : > { %7592 = sst [smem:[#allocation8_spill]] %s5957_s27  ;;  %s383_s28 = sadd.s32 1, %s5834_s23 }
   0xa   : > { %s380_s29 = ssub.s32 %s5838_s24, %s5957_s27  ;;  %p393_p0 = scmp.ne.s32.totalorder %s5834_s23, %s5830_s22 }
   0xb   : > { %p381_p1 = scmp.eq.s32.totalorder %s380_s29, 0  ;;  %p394_p2 = scmp.eq.s32.totalorder %s5953_s25, 1 }
   0xc   : > { %p399_p3 = scmp.ne.s32.totalorder %s5830_s22, %s5826_s21  ;;  %p400_p4 = scmp.eq.s32.totalorder %s4261_s26, 1 }
   0xd   : > { %s5968_s30 = scalar_select %p381_p1, %s5834_s23, %s383_s28  }
   0xe   : > { %p5970_p5 = por %p394_p2, %p393_p0  ;;  %p5974_p6 = por %p400_p4, %p399_p3 }
   0xf   : > { %7593 = sst [smem:[#allocation9_spill]] %s5968_s30  ;;  %p4264_p7 = scmp.ge.s32.totalorder %s5838_s24, 1 }
  0x10   : > { %s7594_s0 = scalar_select %p5970_p5, 1, 0 }
  0x11   : > { %s7596_s17 = scalar_select %p5974_p6, 1, 0 }
  0x12   : > { %7595 = sst [smem:[#allocation10_spill]] %s7594_s0  ;;  %p468_p8 = scmp.lt.s32.totalorder %s5838_s24, 3 }
  0x13   : > { %7597 = sst [smem:[#allocation11_spill]] %s7596_s17 }
  0x14   : > { %p469_p9 = pnand %p4264_p7, %p468_p8 }
  0x15   : > { %v5542_v0 = vld [vmem:[%s7562_s1 + $0x4] ss:$8 sps:$4 sm:$0xff] (!%p469_p9)   ;;  %v5544_v1 = vld [vmem:[%s7562_s1] ss:$8 sps:$4 sm:$0xff] (!%p469_p9)   ;;  %v5840_v2 = vmov (!%p469_p9), 0   ;;  %p520_p10 = scmp.lt.s32.totalorder (!%p469_p9), %s5953_s25, 1 }
  0x16   : > { %472 = sbr.rel (%p469_p9) target bundleno = 2840 (0xb18), region = 80  ;;  %647 = vmatprep.mubr.bf16.mxu0 (!%p469_p9), %v5840_v2  ;;  %615 = vmatprep.subr.bf16.mxu0 (!%p469_p9), %v5542_v0  ;;  %v5545_v3 = vld [vmem:[%s7562_s1 + $0x14] ss:$8 sps:$4 sm:$0xff] (!%p469_p9)   ;;  %v5547_v4 = vld [vmem:[%s7562_s1 + $0x10] ss:$8 sps:$4 sm:$0xff] (!%p469_p9)   ;;  %s7598_s27 = sld [smem:[#allocation12_spill]] (!%p469_p9) }
  0x17   : > { %616 = vmatpush1.bf16.msra.mxu0 (!%p469_p9), %v5544_v1  ;;  %v5548_v5 = vld [vmem:[%s7562_s1 + $0x24] ss:$8 sps:$4 sm:$0xff] (!%p469_p9)   ;;  %v5550_v6 = vld [vmem:[%s7562_s1 + $0x20] ss:$8 sps:$4 sm:$0xff] (!%p469_p9)   ;;  %v5551_v7 = vld [vmem:[%s7562_s1 + $0x34] ss:$8 sps:$4 sm:$0xff] (!%p469_p9)  }
  0x18   : > { %617 = vmatprep.subr.bf16.mxu0 (!%p469_p9), %v5545_v3  ;;  %v5553_v8 = vld [vmem:[%s7562_s1 + $0x30] ss:$8 sps:$4 sm:$0xff] (!%p469_p9)   ;;  %v5554_v9 = vld [vmem:[%s7562_s1 + $0x44] ss:$8 sps:$4 sm:$0xff] (!%p469_p9)   ;;  %v5556_v10 = vld [vmem:[%s7562_s1 + $0x40] ss:$8 sps:$4 sm:$0xff] (!%p469_p9)  }
  0x19   : > { %v5557_v11 = vld [vmem:[%s7562_s1 + $0x54] ss:$8 sps:$4 sm:$0xff] (!%p469_p9)   ;;  %v5559_v17 = vld [vmem:[%s7562_s1 + $0x50] ss:$8 sps:$4 sm:$0xff] (!%p469_p9)   ;;  %v5562_v18 = vld [vmem:[%s7562_s1 + $0x64] ss:$8 sps:$4 sm:$0xff] (!%p469_p9)  }
  0x1a   : > { %vm1148_vm0 = vcmask (!%p469_p9), 1045504   ;;  %v5560_v22 = vld [vmem:[%s7562_s1 + $0x60] ss:$8 sps:$4 sm:$0xff] (!%p469_p9)   ;;  %vm608_vm1 = vcmask (!%p469_p9), 785408   ;;  %v5565_v23 = vld [vmem:[%s7562_s1 + $0x74] ss:$8 sps:$4 sm:$0xff] (!%p469_p9)  }
  0x1b   : > { %618 = vmatpush1.bf16.msra.mxu0 (!%p469_p9), %v5547_v4  ;;  %v5563_v25 = vld [vmem:[%s7562_s1 + $0x70] ss:$8 sps:$4 sm:$0xff] (!%p469_p9)   ;;  %v5568_v26 = vld [vmem:[%s7562_s1 + $0x84] ss:$8 sps:$4 sm:$0xff] (!%p469_p9)   ;;  %v5566_v27 = vld [vmem:[%s7562_s1 + $0x80] ss:$8 sps:$4 sm:$0xff] (!%p469_p9)  }
  0x1c   : > { %619 = vmatprep.subr.bf16.mxu0 (!%p469_p9), %v5548_v5  ;;  %v5571_v28 = vld [vmem:[%s7562_s1 + $0x94] ss:$8 sps:$4 sm:$0xff] (!%p469_p9)   ;;  %v5569_v29 = vld [vmem:[%s7562_s1 + $0x90] ss:$8 sps:$4 sm:$0xff] (!%p469_p9)   ;;  %v5574_v31 = vld [vmem:[%s7562_s1 + $0xa4] ss:$8 sps:$4 sm:$0xff] (!%p469_p9)  }
  0x1d   : > { %s5998_s20 = scalar_select %p520_p10, %s5953_s25, 1  ;;  %v5572_v32 = vld [vmem:[%s7562_s1 + $0xa0] ss:$8 sps:$4 sm:$0xff]   ;;  %v5577_v36 = vld [vmem:[%s7562_s1 + $0xb4] ss:$8 sps:$4 sm:$0xff]   ;;  %vm856_vm3 = vcmask 1046528  }
  0x1e   : > { %v5575_v37 = vld [vmem:[%s7562_s1 + $0xb0] ss:$8 sps:$4 sm:$0xff]   ;;  %v5580_v38 = vld [vmem:[%s7562_s1 + $0xc4] ss:$8 sps:$4 sm:$0xff]   ;;  %vm700_vm2 = vsmask.f32 7424 }
  0x1f   : > { %s4782_s23 = sshll.u32 %s5998_s20, 5  ;;  %620 = vmatpush1.bf16.msra.mxu0 %v5550_v6  ;;  %v5578_v41 = vld [vmem:[%s7562_s1 + $0xc0] ss:$8 sps:$4 sm:$0xff]   ;;  %v5583_v42 = vld [vmem:[%s7562_s1 + $0xd4] ss:$8 sps:$4 sm:$0xff]   ;;  %vm1296_vm5 = vcmask 1043456   ;;  %s527_s0 = scalar_lea.vmem %s7576_s15, %s5998_s20 }
  0x20   : > { %621 = vmatprep.subr.bf16.mxu0 %v5551_v7  ;;  %s524_s26 = scalar_lea.vmem %s7598_s27, %s4782_s23  ;;  %v5581_v45 = vld [vmem:[%s7562_s1 + $0xd0] ss:$8 sps:$4 sm:$0xff]   ;;  %v5586_v46 = vld [vmem:[%s7562_s1 + $0xe4] ss:$8 sps:$4 sm:$0xff]   ;;  %v5584_v47 = vld [vmem:[%s7562_s1 + $0xe0] ss:$8 sps:$4 sm:$0xff]  }
  0x21   : > { %v529_v12 = vld [vmem:[%s524_s26] sm:$0xff]  ;;  %v530_v13 = vld [vmem:[%s524_s26 + $0x8] sm:$0xff]  ;;  %v531_v14 = vld [vmem:[%s524_s26 + $0x10] sm:$0xff]  ;;  %vm1000_vm4 = vsmask.f32 6400  ;;  %vm5842_vm6 = vmmov 1  }
  0x22   : > { %v532_v15 = vld [vmem:[%s524_s26 + $0x18] sm:$0xff]  ;;  %v6022_v16 = vpack.c.bf16 %v530_v13, %v529_v12  ;;  %v5592_v51 = vld [vmem:[%s7562_s1 + $0x104] ss:$8 sps:$4 sm:$0xff]   ;;  %v5590_v52 = vld [vmem:[%s7562_s1 + $0x100] ss:$8 sps:$4 sm:$0xff]   ;;  %vm1289_vm8 = vcmask 228352  }
  0x23   : > { %622 = vmatpush1.bf16.msra.mxu0 %v5553_v8  ;;  %v6030_v19 = vpack.c.bf16 %v532_v15, %v531_v14  ;;  %v5589_v48 = vld [vmem:[%s7562_s1 + $0xf4] ss:$8 sps:$4 sm:$0xff]   ;;  %v5587_v50 = vld [vmem:[%s7562_s1 + $0xf0] ss:$8 sps:$4 sm:$0xff]   ;;  %v5598_v55 = vld [vmem:[%s7562_s1 + $0x124] ss:$8 sps:$4 sm:$0xff]  }
  0x24   : > { %623 = vmatprep.subr.bf16.mxu0 %v5554_v9  ;;  %v1149_v20 = vrot.slane %v6022_v16, 2  ;;  %v703_v30 = vshll.u32 %v6022_v16, 16  ;;  %v701_v33 = vshrl.u32 %v6022_v16, 16  ;;  %v5595_v53 = vld [vmem:[%s7562_s1 + $0x114] ss:$8 sps:$4 sm:$0xff]   ;;  %v857_v56 = vrot.slane %v6022_v16, 1  ;;  %vm5109_vm7 = vmpackc.low %vm1296_vm5, %vm5842_vm6 }
  0x25   : > { %v1150_v21 = vrot.slane %v6030_v19, 2  ;;  %v707_v35 = vshll.u32 %v6030_v19, 16  ;;  %v711_v43 = vshrl.u32 %v6030_v19, 16  ;;  %v5593_v54 = vld [vmem:[%s7562_s1 + $0x110] ss:$8 sps:$4 sm:$0xff]   ;;  %v858_v57 = vrot.slane %v6030_v19, 1 }
  0x26   : > { %v705_v34 = vrot.slane %v703_v30, 1  ;;  %v5596_v58 = vld [vmem:[%s7562_s1 + $0x120] ss:$8 sps:$4 sm:$0xff]   ;;  %v5601_v59 = vld [vmem:[%s7562_s1 + $0x134] ss:$8 sps:$4 sm:$0xff]   ;;  %v1001_v63 = vrot.slane %v701_v33, 1 }
  0x27   : > { %624 = vmatpush1.bf16.msra.mxu0 %v5556_v10  ;;  %v6042_v24 = vsel %vm1148_vm0, %v1149_v20, %v1150_v21  ;;  %v709_v40 = vrot.slane %v707_v35, 1  ;;  %v859_v60 = vsel %vm856_vm3, %v857_v56, %v858_v57  ;;  %v5599_v61 = vld [vmem:[%s7562_s1 + $0x130] ss:$8 sps:$4 sm:$0xff]   ;;  %v5604_v62 = vld [vmem:[%s7562_s1 + $0x144] ss:$8 sps:$4 sm:$0xff]   ;;  %v1002_v0 = vrot.slane %v703_v30, 2 }
  0x28   : > { %625 = vmatprep.subr.bf16.mxu0 %v5557_v11  ;;  %v706_v39 = vor.u32 %v705_v34, %v701_v33  ;;  %v1004_v1 = vrot.slane %v711_v43, 1  ;;  %v1005_v3 = vrot.slane %v707_v35, 2  ;;  %v5602_v4 = vld [vmem:[%s7562_s1 + $0x140] ss:$8 sps:$4 sm:$0xff]   ;;  %v5607_v5 = vld [vmem:[%s7562_s1 + $0x154] ss:$8 sps:$4 sm:$0xff]   ;;  %v669_v30 = vlaneseq }
  0x29   : > { %v713_v49 = vor.u32 %v711_v43, %v709_v40  ;;  %v5605_v6 = vld [vmem:[%s7562_s1 + $0x150] ss:$8 sps:$4 sm:$0xff]   ;;  %v5610_v7 = vld [vmem:[%s7562_s1 + $0x164] ss:$8 sps:$4 sm:$0xff]   ;;  %v5608_v8 = vld [vmem:[%s7562_s1 + $0x160] ss:$8 sps:$4 sm:$0xff]   ;;  %v1003_v12 = vor.u32 %v1002_v0, %v1001_v63 }
  0x2a   : > { %v710_v44 = vsel %vm700_vm2, %v706_v39, %v709_v40  ;;  %v5613_v9 = vld [vmem:[%s7562_s1 + $0x174] ss:$8 sps:$4 sm:$0xff]   ;;  %v5611_v10 = vld [vmem:[%s7562_s1 + $0x170] ss:$8 sps:$4 sm:$0xff]   ;;  %v5616_v11 = vld [vmem:[%s7562_s1 + $0x184] ss:$8 sps:$4 sm:$0xff]   ;;  %v1006_v13 = vor.u32 %v1005_v3, %v1004_v1 }
  0x2b   : > { %626 = vmatpush1.bf16.msra.mxu0 %v5559_v17  ;;  %v5614_v14 = vld [vmem:[%s7562_s1 + $0x180] ss:$8 sps:$4 sm:$0xff]   ;;  %v5617_v17 = vld [vmem:[%s7562_s1 + $0x190] ss:$8 sps:$4 sm:$0xff]   ;;  %vm1491_vm9 = vcmask 326656   ;;  %vm1788_vm10 = vcmask 1041408  }
  0x2c   : > { %780 = vmatprep.subr.bf16.mxu0 %v5562_v18  ;;  %v1007_v15 = vsel %vm1000_vm4, %v1003_v12, %v1006_v13  ;;  %v5622_v18 = vld [vmem:[%s7562_s1 + $0x1a4] ss:$8 sps:$4 sm:$0xff]   ;;  %v5620_v20 = vld [vmem:[%s7562_s1 + $0x1a0] ss:$8 sps:$4 sm:$0xff]   ;;  %v4389_v3 = vld [vmem:[%s7564_s3 + $0x10] sm:$0xff]  ;;  %vm5844_vm11 = vmmov 0  }
  0x2d   : > { %v1288_v63 = vld [vmem:[%s7564_s3 + $0x8] sm:$0x3f]  ;;  %v1470_v0 = vld [vmem:[%s7565_s4] sm:$0xff]  ;;  %vm1784_vm12 = vcmask 687104   ;;  %vm6932_vm13 = vmpackc.low %vm1788_vm10, %vm5842_vm6  ;;  %vm2775_vm14 = vcmask 80896   ;;  %vm3158_vm15 = vcmask 523264  }
  0x2e   : > { %4279 = vmatmul.mubr.msk.bf16.vlgmr.msra.gmra.mrb[0].mxu0 %vm608_vm1, %v6022_v16  ;;  %v5619_v16 = vld [vmem:[%s7562_s1 + $0x194] ss:$8 sps:$4 sm:$0xff]   ;;  %v1471_v1 = vld [vmem:[%s7565_s4 + $0x8] sm:$0xff]  ;;  %s5845_s27 = smov 48   ;;  %vm3535_vm0 = vcmask 392192   ;;  %vm3989_vm2 = vcmask 982016  }
  0x2f   : > { %781 = vmatpush1.bf16.msra.mxu0 %v5560_v22  ;;  %657 = vmatprep.mubr.bf16.mxu0 %v5840_v2  ;;  %v5625_v22 = vld [vmem:[%s7562_s1 + $0x1b4] ss:$8 sps:$4 sm:$0xff]   ;;  %vm4064_vm3 = vcmask 679936   ;;  %vm4154_vm4 = vcmask 73728   ;;  %s518_s18 = sand.u32 1, %s5830_s22   ;;  %s4779_s19 = sshll.u32 %s5953_s25, 4 }
  0x30   : > { %782 = vmatprep.subr.bf16.mxu0 %v5565_v23  ;;  %v5623_v23 = vld [vmem:[%s7562_s1 + $0x1b0] ss:$8 sps:$4 sm:$0xff]   ;;  %s7602_s17 = sld [smem:[#allocation13_spill]]  ;;  %s4172_s16 = scalar_lea.sflag [#allocation3], %s518_s18 }
  0x31   : > { %s5846_s25 = smov [#allocation2]  }
  0x33   : > { %783 = vmatpush1.bf16.msra.mxu0 %v5563_v25  ;;  %v5628_v25 = vld [vmem:[%s7562_s1 + $0x1c4] ss:$8 sps:$4 sm:$0xff]  }
  0x34   : > { %784 = vmatprep.subr.bf16.mxu0 %v5568_v26  ;;  %v5626_v26 = vld [vmem:[%s7562_s1 + $0x1c0] ss:$8 sps:$4 sm:$0xff]  }
  0x36   : > { %4280 = vmatmul.mubr.msk.bf16.gmra.mrb[4].mxu0 %vm608_vm1, %v6030_v19  ;;  %s7518_s21 = scalar_lea.hbm %s7602_s17, %s4779_s19 }
  0x37   : > { %785 = vmatpush1.bf16.msra.mxu0 %v5566_v27  ;;  %812 = vmatprep.mubr.bf16.mxu0 %v5840_v2  ;;  %v5631_v27 = vld [vmem:[%s7562_s1 + $0x1d4] ss:$8 sps:$4 sm:$0xff]  }
  0x38   : > { %786 = vmatprep.subr.bf16.mxu0 %v5571_v28  ;;  %v5629_v28 = vld [vmem:[%s7562_s1 + $0x1d0] ss:$8 sps:$4 sm:$0xff]  }
  0x3b   : > { %787 = vmatpush1.bf16.msra.mxu0 %v5569_v29  ;;  %v5841_v29 = vmov 0.0  }
  0x3c   : > { %788 = vmatprep.subr.bf16.mxu0 %v5574_v31  ;;  %1367 = vmatprep.mubr.f32.mxu1 %v5841_v29  ;;  %v6211_v31 = vshrl.u32 %v669_v30, 7  ;;  %v1485_v30 = vld [vmem:[%s7565_s4 + $0x78] sm:$0xff] }
  0x3e   : > { %v675_v33 = vsub.s32 1, %v6211_v31 }
  0x3f   : > { %789 = vmatpush1.bf16.msra.mxu0 %v5572_v32  ;;  %v671_v32 = vsub.s32 0, %v6211_v31 }
  0x40   : > { %790 = vmatprep.subr.bf16.mxu0 %v5577_v36 }
  0x43   : > { %791 = vmatpush1.bf16.msra.mxu0 %v5575_v37 }
  0x44   : > { %926 = vmatprep.subr.bf16.mxu0 %v5580_v38 }
  0x46   : > { %4305 = vmatmul.mubr.msk.bf16.vlgmr.msra.gmra.mrb[0].mxu0 %vm608_vm1, %v710_v44 }
  0x47   : > { %927 = vmatpush1.bf16.msra.mxu0 %v5578_v41  ;;  %822 = vmatprep.mubr.bf16.mxu0 %v5840_v2 }
  0x48   : > { %928 = vmatprep.subr.bf16.mxu0 %v5583_v42 }
  0x4b   : > { %929 = vmatpush1.bf16.msra.mxu0 %v5581_v45 }
  0x4c   : > { %930 = vmatprep.subr.bf16.mxu0 %v5586_v46 }
  0x4e   : > { %4306 = vmatmul.mubr.msk.bf16.gmra.mrb[4].mxu0 %vm608_vm1, %v713_v49 }
  0x4f   : > { %931 = vmatpush1.bf16.msra.mxu0 %v5584_v47  ;;  %958 = vmatprep.mubr.bf16.mxu0 %v5840_v2 }
  0x50   : > { %932 = vmatprep.subr.bf16.mxu0 %v5589_v48 }
  0x53   : > { %933 = vmatpush1.bf16.msra.mxu0 %v5587_v50 }
  0x54   : > { %934 = vmatprep.subr.bf16.mxu0 %v5592_v51 }
  0x57   : > { %935 = vmatpush1.bf16.msra.mxu0 %v5590_v52 }
  0x58   : > { %936 = vmatprep.subr.bf16.mxu0 %v5595_v53 }
  0x5b   : > { %937 = vmatpush1.bf16.msra.mxu0 %v5593_v54 }
  0x5c   : > { %1074 = vmatprep.subr.bf16.mxu0 %v5598_v55 }
  0x5e   : > { %4331 = vmatmul.mubr.msk.bf16.vlgmr.msra.gmra.mrb[0].mxu0 %vm608_vm1, %v859_v60 }
  0x5f   : > { %1075 = vmatpush1.bf16.msra.mxu0 %v5596_v58  ;;  %968 = vmatprep.mubr.bf16.mxu0 %v5840_v2 }
  0x60   : > { %1076 = vmatprep.subr.bf16.mxu0 %v5601_v59 }
  0x63   : > { %1077 = vmatpush1.bf16.msra.mxu0 %v5599_v61 }
  0x64   : > { %1078 = vmatprep.subr.bf16.mxu0 %v5604_v62  ;;  %v1287_v62 = vld [vmem:[%s7564_s3] sm:$0xff] }
  0x66   : > { %4332 = vmatmul.mubr.msk.bf16.gmra.mrb[4].mxu0 %vm608_vm1, %v858_v57 }
  0x67   : > { %1079 = vmatpush1.bf16.msra.mxu0 %v5602_v4  ;;  %1106 = vmatprep.mubr.bf16.mxu0 %v5840_v2  ;;  %v5125_v4 = vpack.c.bf16 %v1471_v1, %v1470_v0  ;;  %v4406_v0 = vld [vmem:[%s7565_s4 + $0xf0] sm:$0xff] }
  0x68   : > { %1080 = vmatprep.subr.bf16.mxu0 %v5607_v5  ;;  %v5843_v5 = vmov 0.0|0.0  }
  0x6b   : > { %1081 = vmatpush1.bf16.msra.mxu0 %v5605_v6  ;;  %v1472_v6 = vld [vmem:[%s7565_s4 + $0x10] sm:$0xff] }
  0x6c   : > { %1082 = vmatprep.subr.bf16.mxu0 %v5610_v7  ;;  %v1473_v7 = vld [vmem:[%s7565_s4 + $0x18] sm:$0xff] }
  0x6f   : > { %1083 = vmatpush1.bf16.msra.mxu0 %v5608_v8  ;;  %v4390_v8 = vld [vmem:[%s7564_s3 + $0x18] sm:$0x3f] }
  0x70   : > { %1084 = vmatprep.subr.bf16.mxu0 %v5613_v9  ;;  %v5128_v9 = vpack.c.bf16 %v1473_v7, %v1472_v6  ;;  %v4409_v7 = vld [vmem:[%s7565_s4 + $0x108] sm:$0xff] }
  0x73   : > { %1085 = vmatpush1.bf16.msra.mxu0 %v5611_v10  ;;  %v1474_v10 = vld [vmem:[%s7565_s4 + $0x20] sm:$0xff] }
  0x74   : > { %1218 = vmatprep.subr.bf16.mxu0 %v5616_v11  ;;  %v1475_v11 = vld [vmem:[%s7565_s4 + $0x28] sm:$0xff] }
  0x75   : > { %v5131_v12 = vpack.c.bf16 %v1475_v11, %v1474_v10  ;;  %v4411_v10 = vld [vmem:[%s7565_s4 + $0x118] sm:$0xff]  ;;  %v4412_v11 = vld [vmem:[%s7565_s4 + $0x120] sm:$0xff] }
  0x76   : > { %4357 = vmatmul.mubr.msk.bf16.vlgmr.msra.gmra.mrb[0].mxu0 %vm608_vm1, %v1007_v15 }
  0x77   : > { %1219 = vmatpush1.bf16.msra.mxu0 %v5614_v14  ;;  %1116 = vmatprep.mubr.bf16.mxu0 %v5840_v2  ;;  %v1477_v14 = vld [vmem:[%s7565_s4 + $0x38] sm:$0xff] }
  0x78   : > { %1220 = vmatprep.subr.bf16.mxu0 %v5619_v16  ;;  %v1478_v16 = vld [vmem:[%s7565_s4 + $0x40] sm:$0xff] }
  0x7b   : > { %1221 = vmatpush1.bf16.msra.mxu0 %v5617_v17  ;;  %v1479_v17 = vld [vmem:[%s7565_s4 + $0x48] sm:$0xff] }
  0x7c   : > { %1222 = vmatprep.subr.bf16.mxu0 %v5622_v18  ;;  %v5137_v18 = vpack.c.bf16 %v1479_v17, %v1478_v16  ;;  %v4415_v16 = vld [vmem:[%s7565_s4 + $0x138] sm:$0xff]  ;;  %v4416_v17 = vld [vmem:[%s7565_s4 + $0x140] sm:$0xff] }
  0x7e   : > { %4358 = vmatmul.mubr.msk.bf16.gmra.mrb[4].mxu0 %vm608_vm1, %v1006_v13  ;;  %v1476_v13 = vld [vmem:[%s7565_s4 + $0x30] sm:$0xff] }
  0x7f   : > { %1223 = vmatpush1.bf16.msra.mxu0 %v5620_v20  ;;  %1250 = vmatprep.mubr.bf16.mxu0 %v5840_v2  ;;  %v5134_v15 = vpack.c.bf16 %v1477_v14, %v1476_v13  ;;  %v1480_v20 = vld [vmem:[%s7565_s4 + $0x50] sm:$0xff]  ;;  %v4413_v13 = vld [vmem:[%s7565_s4 + $0x128] sm:$0xff] }
  0x80   : > { %1224 = vmatprep.subr.bf16.mxu0 %v5625_v22  ;;  %v1481_v22 = vld [vmem:[%s7565_s4 + $0x58] sm:$0xff]  ;;  %v4414_v14 = vld [vmem:[%s7565_s4 + $0x130] sm:$0xff] }
  0x83   : > { %1225 = vmatpush1.bf16.msra.mxu0 %v5623_v23  ;;  %v5140_v23 = vpack.c.bf16 %v1481_v22, %v1480_v20  ;;  %v4417_v20 = vld [vmem:[%s7565_s4 + $0x148] sm:$0xff] }
  0x84   : > { %1226 = vmatprep.subr.bf16.mxu0 %v5628_v25  ;;  %v1482_v25 = vld [vmem:[%s7565_s4 + $0x60] sm:$0xff] }
  0x85   : > { %v5632_v22 = vld [vmem:[%s7566_s5] ss:$12 sps:$4 sm:$0xff]  }
  0x87   : > { %1227 = vmatpush1.bf16.msra.mxu0 %v5626_v26  ;;  %v1483_v26 = vld [vmem:[%s7565_s4 + $0x68] sm:$0xff] }
  0x88   : > { %1228 = vmatprep.subr.bf16.mxu0 %v5631_v27  ;;  %v5143_v27 = vpack.c.bf16 %v1483_v26, %v1482_v25  ;;  %v5637_v25 = vld [vmem:[%s7566_s5 + $0x1c] ss:$12 sps:$4 sm:$0xff]   ;;  %v5638_v26 = vld [vmem:[%s7566_s5 + $0x8c] ss:$12 sps:$4 sm:$0xff]  }
  0x8b   : > { %1229 = vmatpush1.bf16.msra.mxu0 %v5629_v28  ;;  %v1484_v28 = vld [vmem:[%s7565_s4 + $0x70] sm:$0xff] }
  0x8c   : > { %4898 = vmatprep.subr.bf16.mxu0 %v5841_v29 }
  0x8e   : > { %4383 = vmatmul.mubr.msk.bf16.vlgmr.msra.gmra.mrb[0].mxu0 %vm608_vm1, %v6042_v24  ;;  %v533_v24 = vld [vmem:[%s7563_s2] sm:$0x3] }
  0x8f   : > { %1260 = vmatprep.mubr.bf16.mxu0 %v5840_v2  ;;  %v672_v19 = vrot.slane %v533_v24, %v671_v32  ;;  %4899 = vmatpush3.bf16.msra.mxu0 %v5638_v26  ;;  %v5684_v26 = vld [vmem:[%s7566_s5 + $0xe8] ss:$12 sps:$4 sm:$0xff]  }
  0x90   : > { %4900 = vmatprep.subr.bf16.mxu0 %v5841_v29 }
  0x96   : > { %4384 = vmatmul.mubr.msk.bf16.gmra.mrb[4].mxu0 %vm608_vm1, %v1150_v21  ;;  %v676_v21 = vrot.slane %v533_v24, %v675_v33  ;;  %v5146_v24 = vpack.c.bf16 %v1485_v30, %v1484_v28  ;;  %v5642_v28 = vld [vmem:[%s7566_s5 + $0xa4] ss:$12 sps:$4 sm:$0xff]   ;;  %v5641_v30 = vld [vmem:[%s7566_s5 + $0x34] ss:$12 sps:$4 sm:$0xff]   ;;  %vm3581_vm1 = vcmask 654336  }
  0x97   : > { %4901 = vmatpush3.bf16.msra.mxu0 %v5642_v28  ;;  %4910 = vmatprep.mubr.msk.bf16.mxu0 %vm5844_vm11, %v5841_v29  ;;  %v4461_v28 = vld [vmem:[%s7566_s5 + $0xfc] sm:$0x33] }
  0x98   : > { %4902 = vmatprep.subr.bf16.mxu0 %v5841_v29 }
 0x161   : > { %v1252_v34 = vpop.f32.mrb[0].mxu0 }
 0x162   : > { %v5400_v35 = vadd.f32 %v1252_v34, %v672_v19  ;;  %v1254_v36 = vpop.f32.mrb[1].mxu0 }
 0x163   : > { %v5401_v37 = vadd.f32 %v1254_v36, %v676_v21  ;;  %v1256_v38 = vpop.f32.mrb[2].mxu0  ;;  %v1489_v36 = vld [vmem:[%s7565_s4 + $0x98] sm:$0xff] }
 0x164   : > { %v5402_v39 = vadd.f32 %v1256_v38, %v672_v19  ;;  %v1258_v40 = vpop.f32.mrb[3].mxu0  ;;  %v1279_v42 = vmax.f32 %v5400_v35, 0.0  ;;  %v1488_v35 = vld [vmem:[%s7565_s4 + $0x90] sm:$0xff]  ;;  %v1490_v38 = vld [vmem:[%s7565_s4 + $0xa0] sm:$0xff] }
 0x165   : > { %v5403_v41 = vadd.f32 %v1258_v40, %v676_v21  ;;  %v1280_v44 = vmax.f32 %v5401_v37, 0.0  ;;  %v5152_v37 = vpack.c.bf16 %v1489_v36, %v1488_v35  ;;  %v5649_v35 = vld [vmem:[%s7566_s5 + $0x64] ss:$12 sps:$4 sm:$0xff]   ;;  %v5647_v36 = vld [vmem:[%s7566_s5 + $0x60] ss:$12 sps:$4 sm:$0xff]  }
 0x166   : > { %v1281_v43 = vmax.f32 %v5402_v39, 0.0 }
 0x167   : > { %v1282_v45 = vmax.f32 %v5403_v41, 0.0 }
 0x168   : > { %v5106_v46 = vpack.c.bf16 %v1281_v43, %v1279_v42  ;;  %v4397_v43 = vld [vmem:[%s7565_s4 + $0xa8] sm:$0xff] }
 0x169   : > { %v1262_v47 = vpop.f32.mrb[4].mxu0  ;;  %v5104_v48 = vpack.c.bf16 %v1282_v45, %v1280_v44  ;;  %v4398_v44 = vld [vmem:[%s7565_s4 + $0xb0] sm:$0xff] }
 0x16a   : > { %v5404_v49 = vadd.f32 %v1262_v47, %v672_v19  ;;  %v1264_v50 = vpop.f32.mrb[5].mxu0 }
 0x16b   : > { %v5405_v51 = vadd.f32 %v1264_v50, %v676_v21  ;;  %v1266_v52 = vpop.f32.mrb[6].mxu0  ;;  %5105 = vmatprep.subr.bf16.mxu1 %v5104_v48  ;;  %v4399_v50 = vld [vmem:[%s7565_s4 + $0xb8] sm:$0xff] }
 0x16c   : > { %v5406_v53 = vadd.f32 %v1266_v52, %v672_v19  ;;  %v1268_v54 = vpop.f32.mrb[7].mxu0  ;;  %5107 = vmatpush1.bf16.msra.mxu1 %v5106_v46  ;;  %v1283_v56 = vmax.f32 %v5404_v49, 0.0  ;;  %v1486_v19 = vld [vmem:[%s7565_s4 + $0x80] sm:$0xff]  ;;  %v5155_v49 = vpack.c.bf16 %v4398_v44, %v4397_v43 }
 0x16d   : > { %v5407_v55 = vadd.f32 %v1268_v54, %v676_v21  ;;  %v1284_v58 = vmax.f32 %v5405_v51, 0.0  ;;  %v1487_v21 = vld [vmem:[%s7565_s4 + $0x88] sm:$0xff]  ;;  %v4400_v51 = vld [vmem:[%s7565_s4 + $0xc0] sm:$0xff] }
 0x16e   : > { %v1285_v57 = vmax.f32 %v5406_v53, 0.0  ;;  %v5149_v34 = vpack.c.bf16 %v1487_v21, %v1486_v19  ;;  %v5646_v19 = vld [vmem:[%s7566_s5 + $0xbc] ss:$12 sps:$4 sm:$0xff]   ;;  %v5645_v21 = vld [vmem:[%s7566_s5 + $0x4c] ss:$12 sps:$4 sm:$0xff]  }
 0x16f   : > { %v1286_v59 = vmax.f32 %v5407_v55, 0.0  ;;  %4903 = vmatpush3.bf16.msra.mxu0 %v5646_v19  ;;  %v5655_v43 = vld [vmem:[%s7566_s5 + $0x104] ss:$0 sps:$4 sm:$0x33]   ;;  %v4478_v19 = vcombine.low %v4461_v28, %v4461_v28 }
 0x170   : > { %v5111_v60 = vpack.c.bf16 %v1285_v57, %v1283_v56  ;;  %v5158_v56 = vpack.c.bf16 %v4400_v51, %v4399_v50  ;;  %v4401_v57 = vld [vmem:[%s7565_s4 + $0xc8] sm:$0xff]  ;;  %4904 = vmatprep.subr.bf16.mxu0 %v5841_v29  ;;  %v2031_v44 = vsel %vm1788_vm10, %v5655_v43, 0 }
 0x171   : > { %v5108_v61 = vpack.c.bf16 %v1286_v59, %v1284_v58  ;;  %v4402_v58 = vld [vmem:[%s7565_s4 + $0xd0] sm:$0xff]  ;;  %v5693_v43 = vld [vmem:[%s7566_s5 + $0x120] ss:$12 sps:$4 sm:$0xff]  }
 0x172   : > { %v5161_v59 = vpack.c.bf16 %v4402_v58, %v4401_v57  ;;  %v5656_v58 = vld [vmem:[%s7566_s5 + $0x20] ss:$12 sps:$4 sm:$0xff]  }
 0x173   : > { %5110 = vmatprep.subr.msk.bf16.mxu1 %vm5109_vm7, %v5108_v61 }
 0x174   : > { %5113 = vmatpush1.bf16.msk.msra.mxu1 %vm5109_vm7, %v5111_v60 }
 0x175   : > { %5115 = vmatprep.subr.bf16.mxu1 %v5104_v48 }
 0x177   : > { %4387 = vmatmul.mubr.msk.f32.vlgmr.msra.gmra.mrb[0].mxu1 %vm1289_vm8, %v1287_v62 }
 0x178   : > { %5117 = vmatpush1.bf16.msra.mxu1 %v5106_v46  ;;  %1373 = vmatprep.mubr.f32.mxu1 %v5841_v29 }
 0x179   : > { %5120 = vmatprep.subr.msk.bf16.mxu1 %vm5109_vm7, %v5108_v61  ;;  %v4404_v61 = vld [vmem:[%s7565_s4 + $0xe0] sm:$0xff] }
 0x17b   : > { %4388 = vmatmul.mubr.msk.f32.gmra.mrb[2].mxu1 %vm1289_vm8, %v1288_v63  ;;  %v4405_v63 = vld [vmem:[%s7565_s4 + $0xe8] sm:$0xff] }
 0x17c   : > { %5123 = vmatpush1.bf16.msk.msra.mxu1 %vm5109_vm7, %v5111_v60  ;;  %1453 = vmatprep.mubr.f32.mxu1 %v5841_v29  ;;  %v4403_v60 = vld [vmem:[%s7565_s4 + $0xd8] sm:$0xff]  ;;  %v5167_v1 = vpack.c.bf16 %v4406_v0, %v4405_v63  ;;  %v5659_v0 = vld [vmem:[%s7566_s5 + $0x128] ss:$12 sps:$4 sm:$0xff]  }
 0x17d   : > { %5124 = vmatprep.subr.bf16.mxu1 %v5843_v5  ;;  %v5164_v62 = vpack.c.bf16 %v4404_v61, %v4403_v60  ;;  %v5657_v61 = vld [vmem:[%s7566_s5 + $0x110] ss:$12 sps:$4 sm:$0xff]   ;;  %v5658_v63 = vld [vmem:[%s7566_s5 + $0x38] ss:$12 sps:$4 sm:$0xff]  }
 0x17f   : > { %4393 = vmatmul.mubr.msk.f32.vlgmr.msra.gmra.mrb[4].mxu1 %vm1289_vm8, %v4389_v3  ;;  %v4407_v3 = vld [vmem:[%s7565_s4 + $0xf8] sm:$0xff] }
 0x180   : > { %1459 = vmatprep.mubr.f32.mxu1 %v5841_v29  ;;  %5126 = vmatpush1.bf16.msra.mxu1 %v5125_v4  ;;  %v4408_v4 = vld [vmem:[%s7565_s4 + $0x100] sm:$0xff] }
 0x181   : > { %5127 = vmatprep.subr.bf16.mxu1 %v5843_v5  ;;  %v5170_v6 = vpack.c.bf16 %v4408_v4, %v4407_v3  ;;  %v5661_v3 = vld [vmem:[%s7566_s5 + $0x140] ss:$12 sps:$4 sm:$0xff]   ;;  %v5662_v4 = vld [vmem:[%s7566_s5 + $0x68] ss:$12 sps:$4 sm:$0xff]  }
 0x183   : > { %4394 = vmatmul.mubr.msk.f32.gmra.mrb[6].mxu1 %vm1289_vm8, %v4390_v8  ;;  %v4410_v8 = vld [vmem:[%s7565_s4 + $0x110] sm:$0xff] }
 0x184   : > { %5129 = vmatpush1.bf16.msra.mxu1 %v5128_v9  ;;  %v5173_v9 = vpack.c.bf16 %v4410_v8, %v4409_v7  ;;  %v5663_v7 = vld [vmem:[%s7566_s5 + $0x158] ss:$12 sps:$4 sm:$0xff]  }
 0x185   : > { %5130 = vmatprep.subr.bf16.mxu1 %v5843_v5 }
 0x188   : > { %5132 = vmatpush1.bf16.msra.mxu1 %v5131_v12  ;;  %v5176_v12 = vpack.c.bf16 %v4412_v11, %v4411_v10  ;;  %v5665_v10 = vld [vmem:[%s7566_s5 + $0x170] ss:$12 sps:$4 sm:$0xff]   ;;  %v5669_v11 = vld [vmem:[%s7566_s5 + $0x188] ss:$0 sps:$4 sm:$0x33]  }
 0x189   : > { %5133 = vmatprep.subr.bf16.mxu1 %v5843_v5 }
 0x18c   : > { %5135 = vmatpush1.bf16.msra.mxu1 %v5134_v15  ;;  %v5179_v15 = vpack.c.bf16 %v4414_v14, %v4413_v13  ;;  %v5672_v13 = vld [vmem:[%s7566_s5 + $0xa0] ss:$12 sps:$4 sm:$0xff]   ;;  %v2246_v14 = vsel %vm1788_vm10, %v5669_v11, 0 }
 0x18d   : > { %5136 = vmatprep.subr.bf16.mxu1 %v5843_v5  ;;  %v5725_v11 = vld [vmem:[%s7566_s5 + $0x1ec] ss:$12 sps:$4 sm:$0xff]  }
 0x190   : > { %5138 = vmatpush1.bf16.msra.mxu1 %v5137_v18  ;;  %v5182_v18 = vpack.c.bf16 %v4416_v17, %v4415_v16  ;;  %v5676_v16 = vld [vmem:[%s7566_s5 + $0xb8] ss:$12 sps:$4 sm:$0xff]   ;;  %v5673_v17 = vld [vmem:[%s7566_s5 + $0x194] ss:$12 sps:$4 sm:$0xff]  }
 0x191   : > { %5139 = vmatprep.subr.bf16.mxu1 %v5843_v5 }
 0x194   : > { %5141 = vmatpush1.bf16.msra.mxu1 %v5140_v23  ;;  %v5634_v23 = vld [vmem:[%s7566_s5 + $0x4] ss:$12 sps:$4 sm:$0xff]  }
 0x195   : > { %5142 = vmatprep.subr.bf16.mxu1 %v5843_v5 }
 0x198   : > { %5144 = vmatpush1.bf16.msra.mxu1 %v5143_v27  ;;  %v5635_v27 = vld [vmem:[%s7566_s5 + $0x18] ss:$12 sps:$4 sm:$0xff]  }
 0x199   : > { %5145 = vmatprep.subr.bf16.mxu1 %v5843_v5 }
 0x19c   : > { %5147 = vmatpush1.bf16.msra.mxu1 %v5146_v24  ;;  %v5639_v24 = vld [vmem:[%s7566_s5 + $0x30] ss:$12 sps:$4 sm:$0xff]  }
 0x19d   : > { %5148 = vmatprep.subr.bf16.mxu1 %v5843_v5 }
 0x1a0   : > { %5150 = vmatpush1.bf16.msra.mxu1 %v5149_v34  ;;  %v5643_v34 = vld [vmem:[%s7566_s5 + $0x48] ss:$12 sps:$4 sm:$0xff]  }
 0x1a1   : > { %5151 = vmatprep.subr.bf16.mxu1 %v5843_v5 }
 0x1a4   : > { %5153 = vmatpush1.bf16.msra.mxu1 %v5152_v37  ;;  %v5650_v37 = vld [vmem:[%s7566_s5 + $0xd4] ss:$12 sps:$4 sm:$0xff]  }
 0x1a5   : > { %1538 = vmatprep.subr.mxu1 %v5841_v29  ;;  %4905 = vmatpush3.bf16.msra.mxu0 %v5650_v37  ;;  %v5692_v37 = vld [vmem:[%s7566_s5 + $0x20c] ss:$0 sps:$4 sm:$0x33]  }
 0x1a6   : > { %4906 = vmatprep.subr.bf16.mxu0 %v5841_v29 }
 0x1a8   : > { %1539 = vmatpush1.msra.mxu1 %v1490_v38  ;;  %v1694_v38 = vld [vmem:[%s7566_s5 + $0x78] sm:$0x33] }
 0x1a9   : > { %5154 = vmatprep.subr.bf16.mxu1 %v5843_v5 }
 0x24a   : > { %v1369_v39 = vpop.f32.mrb[0].mxu1 }
 0x24b   : > { %v1371_v40 = vpop.f32.mrb[1].mxu1 }
 0x24e   : > { %v1375_v41 = vpop.f32.mrb[2].mxu1 }
 0x24f   : > { %v1377_v42 = vpop.f32.mrb[3].mxu1 }
 0x252   : > { %v1455_v45 = vpop.f32.mrb[4].mxu1 }
 0x253   : > { %v1466_v46 = vmax.f32 %v1369_v39, %v1455_v45  ;;  %v1457_v47 = vpop.f32.mrb[5].mxu1  ;;  %v4436_v39 = vcombine.high %v1694_v38, %v1694_v38 }
 0x254   : > { %v1467_v48 = vmax.f32 %v1371_v40, %v1457_v47  ;;  %v4435_v40 = vcombine.low %v1694_v38, %v1694_v38  ;;  %v5689_v38 = vld [vmem:[%s7566_s5 + $0x108] ss:$12 sps:$4 sm:$0xff]  }
 0x256   : > { %v1461_v52 = vpop.f32.mrb[6].mxu1  ;;  %4395 = vmatprep.mubr.msk.f32.mxu1 %vm1491_vm9, %v1467_v48 }
 0x257   : > { %v1468_v53 = vmax.f32 %v1375_v41, %v1461_v52  ;;  %v1463_v54 = vpop.f32.mrb[7].mxu1  ;;  %1563 = vmatmul.mubr.f32.vlgmr.msra.gmra.mrb[8].mxu1 %v1466_v46  ;;  %v1790_v41 = vsel %vm1788_vm10, %v4435_v40, 0  ;;  %v2462_v40 = vsel %vm1788_vm10, %v5692_v37, 0 }
 0x258   : > { %v1469_v55 = vmax.f32 %v1377_v42, %v1463_v54  ;;  %5156 = vmatpush1.bf16.msra.mxu1 %v5155_v49  ;;  %v5653_v42 = vld [vmem:[%s7566_s5 + $0xec] ss:$12 sps:$4 sm:$0xff]  }
 0x259   : > { %5157 = vmatprep.subr.bf16.mxu1 %v5843_v5  ;;  %4907 = vmatpush3.bf16.msra.mxu0 %v5653_v42 }
 0x25a   : > { %4396 = vmatprep.mubr.msk.f32.mxu1 %vm1491_vm9, %v1469_v55  ;;  %4908 = vmatprep.subr.bf16.mxu0 %v5841_v29 }
 0x25b   : > { %1568 = vmatmul.mubr.f32.gmra.mrb[10].mxu1 %v1468_v53 }
 0x25c   : > { %5159 = vmatpush1.bf16.msra.mxu1 %v5158_v56  ;;  %4418 = vmatprep.mubr.msk.f32.mxu1 %vm1491_vm9, %v1467_v48 }
 0x25d   : > { %5160 = vmatprep.subr.bf16.mxu1 %v5843_v5  ;;  %4909 = vmatpush3.bf16.msra.mxu0 %v2031_v44  ;;  %v5699_v44 = vld [vmem:[%s7566_s5 + $0x13c] ss:$12 sps:$4 sm:$0xff]  }
 0x25e   : > { %4914 = vmatprep.subr.bf16.mxu0 %v5841_v29 }
 0x260   : > { %5162 = vmatpush1.bf16.msra.mxu1 %v5161_v59 }
 0x261   : > { %5163 = vmatprep.subr.bf16.mxu1 %v5843_v5 }
 0x264   : > { %5165 = vmatpush1.bf16.msra.mxu1 %v5164_v62 }
 0x265   : > { %5166 = vmatprep.subr.bf16.mxu1 %v5843_v5 }
 0x268   : > { %5168 = vmatpush1.bf16.msra.mxu1 %v5167_v1  ;;  %v5660_v1 = vld [vmem:[%s7566_s5 + $0x50] ss:$12 sps:$4 sm:$0xff]  }
 0x269   : > { %5169 = vmatprep.subr.bf16.mxu1 %v5843_v5 }
 0x26c   : > { %5171 = vmatpush1.bf16.msra.mxu1 %v5170_v6  ;;  %v5664_v6 = vld [vmem:[%s7566_s5 + $0x80] ss:$0 sps:$4 sm:$0x33]  }
 0x26d   : > { %5172 = vmatprep.subr.bf16.mxu1 %v5843_v5  ;;  %v1796_v8 = vsel %vm1788_vm10, %v5664_v6, 0 }
 0x270   : > { %5174 = vmatpush1.bf16.msra.mxu1 %v5173_v9  ;;  %v5668_v9 = vld [vmem:[%s7566_s5 + $0x88] ss:$12 sps:$4 sm:$0xff]  }
 0x271   : > { %5175 = vmatprep.subr.bf16.mxu1 %v5843_v5 }
 0x274   : > { %5177 = vmatpush1.bf16.msra.mxu1 %v5176_v12  ;;  %v5666_v12 = vld [vmem:[%s7566_s5 + $0x84] ss:$12 sps:$4 sm:$0xff]  }
 0x275   : > { %5178 = vmatprep.subr.bf16.mxu1 %v5843_v5 }
 0x278   : > { %5180 = vmatpush1.bf16.msra.mxu1 %v5179_v15  ;;  %v5670_v15 = vld [vmem:[%s7566_s5 + $0x9c] ss:$12 sps:$4 sm:$0xff]  }
 0x279   : > { %5181 = vmatprep.subr.bf16.mxu1 %v5843_v5 }
 0x27c   : > { %5183 = vmatpush1.bf16.msra.mxu1 %v5182_v18 }
 0x27d   : > { %1635 = vmatprep.subr.mxu1 %v5841_v29 }
 0x280   : > { %1636 = vmatpush1.msra.mxu1 %v4417_v20  ;;  %v5674_v20 = vld [vmem:[%s7566_s5 + $0xb4] ss:$12 sps:$4 sm:$0xff]  }
 0x281   : > { %1660 = vmatmul.mubr.f32.vlgmr.msra.gmra.mrb[12].mxu1 %v1466_v46  ;;  %1798 = vmatprep.subr.bf16.mxu1 %v5634_v23  ;;  %v5677_v23 = vld [vmem:[%s7566_s5 + $0x1ac] ss:$12 sps:$4 sm:$0xff]  }
 0x282   : > { %4419 = vmatprep.mubr.msk.f32.mxu1 %vm1491_vm9, %v1469_v55  ;;  %1799 = vmatpush1.bf16.msra.mxu1 %v5632_v22  ;;  %v5654_v55 = vld [vmem:[%s7566_s5 + $0x8] ss:$12 sps:$4 sm:$0xff]   ;;  %v5680_v22 = vld [vmem:[%s7566_s5 + $0xd0] ss:$12 sps:$4 sm:$0xff]  }
 0x283   : > { %1800 = vmatprep.subr.bf16.mxu1 %v5637_v25  ;;  %v5678_v25 = vld [vmem:[%s7566_s5 + $0xcc] ss:$12 sps:$4 sm:$0xff]  }
 0x285   : > { %1665 = vmatmul.mubr.f32.gmra.mrb[14].mxu1 %v1468_v53 }
 0x286   : > { %1830 = vmatprep.mubr.bf16.mxu1 %v5840_v2  ;;  %1801 = vmatpush1.bf16.msra.mxu1 %v5635_v27  ;;  %v5681_v27 = vld [vmem:[%s7566_s5 + $0x1c4] ss:$12 sps:$4 sm:$0xff]  }
 0x287   : > { %1802 = vmatprep.subr.bf16.mxu1 %v5641_v30  ;;  %v5682_v30 = vld [vmem:[%s7566_s5 + $0xe4] ss:$12 sps:$4 sm:$0xff]  }
 0x28a   : > { %1803 = vmatpush1.bf16.msra.mxu1 %v5639_v24  ;;  %v4479_v24 = vcombine.high %v4461_v28, %v4461_v28 }
 0x28b   : > { %1804 = vmatprep.subr.bf16.mxu1 %v5645_v21  ;;  %v5685_v21 = vld [vmem:[%s7566_s5 + $0x1dc] ss:$12 sps:$4 sm:$0xff]  }
 0x28e   : > { %1805 = vmatpush1.bf16.msra.mxu1 %v5643_v34  ;;  %v2025_v34 = vsel %vm1788_vm10, %v4478_v19, 0  ;;  %v3079_v19 = vld [vmem:[%s7569_s8 + $0x8] sm:$0xff] }
 0x28f   : > { %1806 = vmatprep.subr.bf16.mxu1 %v5649_v35  ;;  %v5691_v35 = vld [vmem:[%s7566_s5 + $0x10c] ss:$12 sps:$4 sm:$0xff]  }
 0x292   : > { %1807 = vmatpush1.bf16.msra.mxu1 %v5647_v36  ;;  %v5688_v36 = vld [vmem:[%s7566_s5 + $0x1f4] ss:$12 sps:$4 sm:$0xff]  }
 0x293   : > { %4438 = vmatprep.subr.msk.bf16.mxu1 %vm1788_vm10, %v4436_v39  ;;  %v5695_v39 = vld [vmem:[%s7566_s5 + $0x124] ss:$12 sps:$4 sm:$0xff]  }
 0x296   : > { %1809 = vmatpush1.bf16.msra.mxu1 %v1790_v41 }
 0x297   : > { %4882 = vmatprep.subr.bf16.mxu1 %v5841_v29 }
 0x32a   : > { %v1564_v45 = vpop.f32.mrb[8].mxu1 }
 0x32b   : > { %v1566_v46 = vpop.f32.mrb[9].mxu1 }
 0x32e   : > { %v1569_v47 = vpop.f32.mrb[10].mxu1 }
 0x32f   : > { %v1571_v48 = vpop.f32.mrb[11].mxu1 }
 0x330   : > { %v5703_v48 = vld [vmem:[%s7566_s5 + $0x154] ss:$12 sps:$4 sm:$0xff]  }
 0x354   : > { %v1661_v49 = vpop.f32.mrb[12].mxu1 }
 0x355   : > { %v1670_v50 = vmax.f32 %v1564_v45, %v1661_v49  ;;  %v1663_v51 = vpop.f32.mrb[13].mxu1  ;;  %v5696_v45 = vld [vmem:[%s7566_s5 + $0x218] ss:$12 sps:$4 sm:$0xff]   ;;  %v5700_v49 = vld [vmem:[%s7566_s5 + $0x230] ss:$12 sps:$4 sm:$0xff]  }
 0x356   : > { %v5707_v51 = vld [vmem:[%s7566_s5 + $0x16c] ss:$12 sps:$4 sm:$0xff]  }
 0x358   : > { %v1666_v52 = vpop.f32.mrb[14].mxu1 }
 0x359   : > { %v1671_v53 = vmax.f32 %v1569_v47, %v1666_v52  ;;  %v1668_v54 = vpop.f32.mrb[15].mxu1  ;;  %v5697_v47 = vld [vmem:[%s7566_s5 + $0x138] ss:$12 sps:$4 sm:$0xff]   ;;  %v5704_v52 = vld [vmem:[%s7566_s5 + $0x248] ss:$12 sps:$4 sm:$0xff]  }
 0x35a   : > { %v5705_v54 = vld [vmem:[%s7566_s5 + $0x168] ss:$12 sps:$4 sm:$0xff]  }
 0x35b   : > { %v6462_v56 = vpack.c.bf16 %v1671_v53, %v1670_v50  ;;  %v5701_v50 = vld [vmem:[%s7566_s5 + $0x150] ss:$12 sps:$4 sm:$0xff]   ;;  %v4504_v53 = vld [vmem:[%s7566_s5 + $0x180] sm:$0x33] }
 0x35d   : > { %v1929_v57 = vshll.u32 %v6462_v56, 16  ;;  %4439 = vmatmul.mubr.msk.bf16.vlgmr.msra.gmra.mrb[16].mxu1 %vm1784_vm12, %v6462_v56  ;;  %v1927_v59 = vshrl.u32 %v6462_v56, 16  ;;  %v2147_v18 = vrot.slane %v6462_v56, 1  ;;  %v2577_v6 = vrot.slane %v6462_v56, 2 }
 0x35e   : > { %4883 = vmatpush3.bf16.msra.mxu1 %v5654_v55  ;;  %4894 = vmatprep.mubr.msk.bf16.mxu1 %vm5844_vm11, %v5841_v29  ;;  %v4522_v55 = vcombine.high %v4504_v53, %v4504_v53 }
 0x35f   : > { %4884 = vmatprep.subr.bf16.mxu1 %v5841_v29  ;;  %v1931_v60 = vrot.slane %v1929_v57, 1  ;;  %v2361_v41 = vrot.slane %v1927_v59, 1  ;;  %v2362_v42 = vrot.slane %v1929_v57, 2  ;;  %v4521_v57 = vcombine.low %v4504_v53, %v4504_v53 }
 0x361   : > { %v6481_v62 = vor.u32 %v1931_v60, %v1927_v59  ;;  %v6619_v46 = vor.u32 %v2362_v42, %v2361_v41  ;;  %v2240_v59 = vsel %vm1788_vm10, %v4521_v57, 0  ;;  %v5714_v60 = vld [vmem:[%s7566_s5 + $0x190] ss:$12 sps:$4 sm:$0xff]   ;;  %v3082_v41 = vld [vmem:[%s7569_s8 + $0x20] sm:$0xff] }
 0x362   : > { %4885 = vmatpush3.bf16.msra.mxu1 %v5656_v58  ;;  %v5708_v58 = vld [vmem:[%s7566_s5 + $0x260] ss:$12 sps:$4 sm:$0xff]   ;;  %v3084_v42 = vld [vmem:[%s7569_s8 + $0x30] sm:$0xff] }
 0x363   : > { %4911 = vmatmul.mubr.msk.bf16.vlgmr.msra.gmra.mrb[8].mxu0 %vm1784_vm12, %v6481_v62  ;;  %4886 = vmatprep.subr.bf16.mxu1 %v5841_v29 }
 0x364   : > { %4915 = vmatpush3.bf16.msra.mxu0 %v5657_v61  ;;  %4926 = vmatprep.mubr.msk.bf16.mxu0 %vm5844_vm11, %v5841_v29  ;;  %v5711_v61 = vld [vmem:[%s7566_s5 + $0x278] ss:$12 sps:$4 sm:$0xff]  }
 0x365   : > { %4916 = vmatprep.subr.bf16.mxu0 %v5841_v29 }
 0x366   : > { %4887 = vmatpush3.bf16.msra.mxu1 %v5658_v63  ;;  %v5712_v63 = vld [vmem:[%s7566_s5 + $0x18c] ss:$12 sps:$4 sm:$0xff]  }
 0x367   : > { %4888 = vmatprep.subr.bf16.mxu1 %v5841_v29 }
 0x368   : > { %4917 = vmatpush3.bf16.msra.mxu0 %v5659_v0  ;;  %v5718_v0 = vld [vmem:[%s7566_s5 + $0x1a8] ss:$12 sps:$4 sm:$0xff]  }
 0x369   : > { %4918 = vmatprep.subr.bf16.mxu0 %v5841_v29 }
 0x36a   : > { %4889 = vmatpush3.bf16.msra.mxu1 %v5660_v1 }
 0x36b   : > { %4890 = vmatprep.subr.bf16.mxu1 %v5841_v29 }
 0x36c   : > { %4919 = vmatpush3.bf16.msra.mxu0 %v5661_v3  ;;  %v5716_v3 = vld [vmem:[%s7566_s5 + $0x1a4] ss:$12 sps:$4 sm:$0xff]  }
 0x36d   : > { %4920 = vmatprep.subr.bf16.mxu0 %v5841_v29 }
 0x36e   : > { %4891 = vmatpush3.bf16.msra.mxu1 %v5662_v4  ;;  %v5721_v4 = vld [vmem:[%s7566_s5 + $0x1c0] ss:$12 sps:$4 sm:$0xff]  }
 0x36f   : > { %4892 = vmatprep.subr.bf16.mxu1 %v5841_v29 }
 0x370   : > { %4921 = vmatpush3.bf16.msra.mxu0 %v5663_v7  ;;  %v5719_v7 = vld [vmem:[%s7566_s5 + $0x1bc] ss:$12 sps:$4 sm:$0xff]  }
 0x371   : > { %4922 = vmatprep.subr.bf16.mxu0 %v5841_v29 }
 0x372   : > { %4893 = vmatpush3.bf16.msra.mxu1 %v1796_v8  ;;  %v5724_v8 = vld [vmem:[%s7566_s5 + $0x1d8] ss:$12 sps:$4 sm:$0xff]  }
 0x373   : > { %2033 = vmatprep.subr.bf16.mxu1 %v5668_v9  ;;  %v5722_v9 = vld [vmem:[%s7566_s5 + $0x1d4] ss:$12 sps:$4 sm:$0xff]  }
 0x374   : > { %4923 = vmatpush3.bf16.msra.mxu0 %v5665_v10  ;;  %v4547_v10 = vld [vmem:[%s7566_s5 + $0x204] sm:$0x33] }
 0x375   : > { %4895 = vmatmul.mubr.msk.bf16.vlgmr.msra.gmra.mrb[20].mxu1 %vm1784_vm12, %v6462_v56  ;;  %4924 = vmatprep.subr.bf16.mxu0 %v5841_v29  ;;  %v5727_v56 = vld [vmem:[%s7566_s5 + $0x1f0] ss:$12 sps:$4 sm:$0xff]  }
 0x376   : > { %2034 = vmatpush1.bf16.msra.mxu1 %v5666_v12  ;;  %2065 = vmatprep.mubr.bf16.mxu1 %v5840_v2  ;;  %v4565_v12 = vcombine.high %v4547_v10, %v4547_v10 }
 0x377   : > { %2035 = vmatprep.subr.bf16.mxu1 %v5672_v13  ;;  %v4564_v13 = vcombine.low %v4547_v10, %v4547_v10  ;;  %v3103_v10 = vld [vmem:[%s7569_s8 + $0xc8] sm:$0xff] }
 0x378   : > { %4925 = vmatpush3.bf16.msra.mxu0 %v2246_v14 }
 0x379   : > { %4930 = vmatprep.subr.bf16.mxu0 %v5841_v29  ;;  %v2456_v14 = vsel %vm1788_vm10, %v4564_v13, 0  ;;  %v3102_v13 = vld [vmem:[%s7569_s8 + $0xc0] sm:$0xff] }
 0x37a   : > { %2036 = vmatpush1.bf16.msra.mxu1 %v5670_v15  ;;  %v5732_v15 = vld [vmem:[%s7566_s5 + $0x214] ss:$12 sps:$4 sm:$0xff]  }
 0x37b   : > { %4927 = vmatmul.mubr.msk.bf16.vlgmr.msra.gmra.mrb[8].mxu0 %vm1784_vm12, %v2147_v18  ;;  %2037 = vmatprep.subr.bf16.mxu1 %v5676_v16  ;;  %v5730_v16 = vld [vmem:[%s7566_s5 + $0x210] ss:$12 sps:$4 sm:$0xff]  }
 0x37c   : > { %4931 = vmatpush3.bf16.msra.mxu0 %v5673_v17  ;;  %4942 = vmatprep.mubr.msk.bf16.mxu0 %vm5844_vm11, %v5841_v29  ;;  %v5735_v17 = vld [vmem:[%s7566_s5 + $0x22c] ss:$12 sps:$4 sm:$0xff]  }
 0x37d   : > { %4932 = vmatprep.subr.bf16.mxu0 %v5841_v29 }
 0x37e   : > { %2038 = vmatpush1.bf16.msra.mxu1 %v5674_v20  ;;  %v5738_v20 = vld [vmem:[%s7566_s5 + $0x244] ss:$12 sps:$4 sm:$0xff]  }
 0x37f   : > { %2039 = vmatprep.subr.bf16.mxu1 %v5680_v22  ;;  %v5736_v22 = vld [vmem:[%s7566_s5 + $0x240] ss:$12 sps:$4 sm:$0xff]  }
 0x380   : > { %4933 = vmatpush3.bf16.msra.mxu0 %v5677_v23  ;;  %v5741_v23 = vld [vmem:[%s7566_s5 + $0x25c] ss:$12 sps:$4 sm:$0xff]  }
 0x381   : > { %4934 = vmatprep.subr.bf16.mxu0 %v5841_v29 }
 0x382   : > { %2040 = vmatpush1.bf16.msra.mxu1 %v5678_v25  ;;  %v5744_v25 = vld [vmem:[%s7566_s5 + $0x274] ss:$12 sps:$4 sm:$0xff]  }
 0x383   : > { %2041 = vmatprep.subr.bf16.mxu1 %v5684_v26  ;;  %v4590_v26 = vld [vmem:[%s7566_s5 + $0x288] sm:$0x33] }
 0x384   : > { %4935 = vmatpush3.bf16.msra.mxu0 %v5681_v27  ;;  %v5742_v27 = vld [vmem:[%s7566_s5 + $0x270] ss:$12 sps:$4 sm:$0xff]   ;;  %v4608_v28 = vcombine.high %v4590_v26, %v4590_v26 }
 0x385   : > { %4936 = vmatprep.subr.bf16.mxu0 %v5841_v29 }
 0x386   : > { %2042 = vmatpush1.bf16.msra.mxu1 %v5682_v30  ;;  %v4607_v30 = vcombine.low %v4590_v26, %v4590_v26 }
 0x387   : > { %4481 = vmatprep.subr.msk.bf16.mxu1 %vm1788_vm10, %v4479_v24 }
 0x388   : > { %4937 = vmatpush3.bf16.msra.mxu0 %v5685_v21  ;;  %v2670_v24 = vsel %vm1788_vm10, %v4607_v30, 0  ;;  %v3081_v21 = vld [vmem:[%s7569_s8 + $0x18] sm:$0xff] }
 0x389   : > { %4938 = vmatprep.subr.bf16.mxu0 %v5841_v29 }
 0x38a   : > { %2044 = vmatpush1.bf16.msra.mxu1 %v2025_v34  ;;  %v5204_v34 = vpack.c.bf16 %v3081_v21, %v3079_v19  ;;  %v3117_v19 = vld [vmem:[%s7569_s8 + $0x138] sm:$0xff] }
 0x38b   : > { %2248 = vmatprep.subr.bf16.mxu1 %v5691_v35  ;;  %v3078_v35 = vld [vmem:[%s7569_s8] sm:$0xff] }
 0x38c   : > { %4939 = vmatpush3.bf16.msra.mxu0 %v5688_v36  ;;  %v3080_v36 = vld [vmem:[%s7569_s8 + $0x10] sm:$0xff] }
 0x38d   : > { %4482 = vmatmul.mubr.msk.bf16.vlgmr.msra.gmra.mrb[16].mxu1 %vm1784_vm12, %v6481_v62  ;;  %4940 = vmatprep.subr.bf16.mxu0 %v5841_v29  ;;  %v5715_v62 = vld [vmem:[%s7566_s5 + $0x290] ss:$0 sps:$4 sm:$0x33]   ;;  %v5206_v37 = vpack.c.bf16 %v3080_v36, %v3078_v35 }
 0x38e   : > { %2249 = vmatpush1.bf16.msra.mxu1 %v5689_v38  ;;  %2280 = vmatprep.mubr.bf16.mxu1 %v5840_v2  ;;  %v2676_v1 = vsel %vm1788_vm10, %v5715_v62, 0  ;;  %v3083_v38 = vld [vmem:[%s7569_s8 + $0x28] sm:$0xff]  ;;  %v3097_v62 = vld [vmem:[%s7569_s8 + $0x98] sm:$0xff]  ;;  %v3116_v35 = vld [vmem:[%s7569_s8 + $0x130] sm:$0xff] }
 0x38f   : > { %2250 = vmatprep.subr.bf16.mxu1 %v5695_v39  ;;  %v3085_v39 = vld [vmem:[%s7569_s8 + $0x38] sm:$0xff] }
 0x390   : > { %4941 = vmatpush3.bf16.msra.mxu0 %v2462_v40  ;;  %v5208_v40 = vpack.c.bf16 %v3085_v39, %v3083_v38  ;;  %v3121_v38 = vld [vmem:[%s7569_s8 + $0x158] sm:$0xff] }
 0x391   : > { %4946 = vmatprep.subr.bf16.mxu0 %v5841_v29 }
 0x392   : > { %2251 = vmatpush1.bf16.msra.mxu1 %v5693_v43  ;;  %v5210_v43 = vpack.c.bf16 %v3084_v42, %v3082_v41  ;;  %v3120_v41 = vld [vmem:[%s7569_s8 + $0x150] sm:$0xff] }
 0x393   : > { %4943 = vmatmul.mubr.msk.bf16.vlgmr.msra.gmra.mrb[8].mxu0 %vm1784_vm12, %v6619_v46  ;;  %2252 = vmatprep.subr.bf16.mxu1 %v5699_v44  ;;  %v3087_v44 = vld [vmem:[%s7569_s8 + $0x48] sm:$0xff] }
 0x394   : > { %4947 = vmatpush3.bf16.msra.mxu0 %v5696_v45  ;;  %4958 = vmatprep.mubr.msk.bf16.mxu0 %vm5844_vm11, %v5841_v29  ;;  %v3089_v45 = vld [vmem:[%s7569_s8 + $0x58] sm:$0xff] }
 0x395   : > { %4948 = vmatprep.subr.bf16.mxu0 %v5841_v29 }
 0x396   : > { %2253 = vmatpush1.bf16.msra.mxu1 %v5697_v47  ;;  %v5212_v47 = vpack.c.bf16 %v3089_v45, %v3087_v44  ;;  %v3125_v44 = vld [vmem:[%s7569_s8 + $0x178] sm:$0xff] }
 0x397   : > { %2254 = vmatprep.subr.bf16.mxu1 %v5703_v48  ;;  %v3086_v48 = vld [vmem:[%s7569_s8 + $0x40] sm:$0xff] }
 0x398   : > { %4949 = vmatpush3.bf16.msra.mxu0 %v5700_v49 }
 0x399   : > { %4950 = vmatprep.subr.bf16.mxu0 %v5841_v29 }
 0x39a   : > { %2255 = vmatpush1.bf16.msra.mxu1 %v5701_v50  ;;  %v3088_v50 = vld [vmem:[%s7569_s8 + $0x50] sm:$0xff] }
 0x39b   : > { %2256 = vmatprep.subr.bf16.mxu1 %v5707_v51 }
 0x39c   : > { %4951 = vmatpush3.bf16.msra.mxu0 %v5704_v52  ;;  %v5214_v52 = vpack.c.bf16 %v3088_v50, %v3086_v48  ;;  %v3124_v48 = vld [vmem:[%s7569_s8 + $0x170] sm:$0xff]  ;;  %v3127_v50 = vld [vmem:[%s7569_s8 + $0x188] sm:$0xff] }
 0x39d   : > { %4952 = vmatprep.subr.bf16.mxu0 %v5841_v29 }
 0x39e   : > { %2257 = vmatpush1.bf16.msra.mxu1 %v5705_v54  ;;  %v3091_v54 = vld [vmem:[%s7569_s8 + $0x68] sm:$0xff] }
 0x39f   : > { %4524 = vmatprep.subr.msk.bf16.mxu1 %vm1788_vm10, %v4522_v55  ;;  %v3093_v55 = vld [vmem:[%s7569_s8 + $0x78] sm:$0xff] }
 0x3a0   : > { %4953 = vmatpush3.bf16.msra.mxu0 %v5708_v58  ;;  %v5216_v57 = vpack.c.bf16 %v3093_v55, %v3091_v54  ;;  %v3090_v58 = vld [vmem:[%s7569_s8 + $0x60] sm:$0xff]  ;;  %v3128_v55 = vld [vmem:[%s7569_s8 + $0x190] sm:$0xff] }
 0x3a1   : > { %4954 = vmatprep.subr.bf16.mxu0 %v5841_v29  ;;  %v3126_v54 = vld [vmem:[%s7569_s8 + $0x180] sm:$0xff] }
 0x3a2   : > { %2259 = vmatpush1.bf16.msra.mxu1 %v2240_v59  ;;  %v3092_v59 = vld [vmem:[%s7569_s8 + $0x70] sm:$0xff] }
 0x3a3   : > { %2464 = vmatprep.subr.bf16.mxu1 %v5714_v60  ;;  %v5218_v60 = vpack.c.bf16 %v3092_v59, %v3090_v58  ;;  %v3131_v58 = vld [vmem:[%s7569_s8 + $0x1a8] sm:$0xff]  ;;  %v3133_v59 = vld [vmem:[%s7569_s8 + $0x1b8] sm:$0xff] }
 0x3a4   : > { %4955 = vmatpush3.bf16.msra.mxu0 %v5711_v61  ;;  %v3095_v61 = vld [vmem:[%s7569_s8 + $0x88] sm:$0xff] }
 0x3a5   : > { %4525 = vmatmul.mubr.msk.bf16.vlgmr.msra.gmra.mrb[16].mxu1 %vm1784_vm12, %v2147_v18  ;;  %4956 = vmatprep.subr.bf16.mxu0 %v5841_v29  ;;  %v5733_v18 = vld [vmem:[%s7566_s5 + $0x228] ss:$12 sps:$4 sm:$0xff]  }
 0x3a6   : > { %2465 = vmatpush1.bf16.msra.mxu1 %v5712_v63  ;;  %2496 = vmatprep.mubr.bf16.mxu1 %v5840_v2  ;;  %v5220_v63 = vpack.c.bf16 %v3097_v62, %v3095_v61  ;;  %v3130_v61 = vld [vmem:[%s7569_s8 + $0x1a0] sm:$0xff]  ;;  %v3132_v62 = vld [vmem:[%s7569_s8 + $0x1b0] sm:$0xff] }
 0x3a7   : > { %2466 = vmatprep.subr.bf16.mxu1 %v5718_v0  ;;  %v3094_v0 = vld [vmem:[%s7569_s8 + $0x80] sm:$0xff] }
 0x3a8   : > { %4957 = vmatpush3.bf16.msra.mxu0 %v2676_v1  ;;  %v3096_v1 = vld [vmem:[%s7569_s8 + $0x90] sm:$0xff] }
 0x3a9   : > { %5205 = vmatprep.subr.bf16.mxu0 %v5204_v34  ;;  %v3114_v34 = vld [vmem:[%s7569_s8 + $0x120] sm:$0xff] }
 0x3aa   : > { %2467 = vmatpush1.bf16.msra.mxu1 %v5716_v3  ;;  %v5222_v3 = vpack.c.bf16 %v3096_v1, %v3094_v0  ;;  %v5242_v36 = vpack.c.bf16 %v3116_v35, %v3114_v34  ;;  %v1672_v0 = vld [vmem:[%s7567_s6] sm:$0x7]  ;;  %v5258_v1 = vpack.c.bf16 %v3132_v62, %v3130_v61 }
 0x3ab   : > { %4959 = vmatmul.mubr.msk.bf16.vlgmr.msra.gmra.mrb[8].mxu0 %vm1784_vm12, %v2577_v6  ;;  %2468 = vmatprep.subr.bf16.mxu1 %v5721_v4  ;;  %v3099_v4 = vld [vmem:[%s7569_s8 + $0xa8] sm:$0xff]  ;;  %v4625_v35 = vld [vmem:[%s7569_s8 + $0x280] sm:$0xff] }
 0x3ac   : > { %5207 = vmatpush1.bf16.msra.mxu0 %v5206_v37  ;;  %v3119_v37 = vld [vmem:[%s7569_s8 + $0x148] sm:$0xff]  ;;  %v4641_v62 = vld [vmem:[%s7569_s8 + $0x300] sm:$0xff] }
 0x3ad   : > { %5209 = vmatprep.subr.bf16.mxu0 %v5208_v40  ;;  %v5244_v39 = vpack.c.bf16 %v3121_v38, %v3119_v37  ;;  %v3118_v40 = vld [vmem:[%s7569_s8 + $0x140] sm:$0xff]  ;;  %v4630_v37 = vld [vmem:[%s7569_s8 + $0x2a8] sm:$0xff]  ;;  %v4632_v38 = vld [vmem:[%s7569_s8 + $0x2b8] sm:$0xff] }
 0x3ae   : > { %2469 = vmatpush1.bf16.msra.mxu1 %v5719_v7  ;;  %v5246_v42 = vpack.c.bf16 %v3120_v41, %v3118_v40  ;;  %v5288_v40 = vpack.c.bf16 %v4632_v38, %v4630_v37  ;;  %v4629_v41 = vld [vmem:[%s7569_s8 + $0x2a0] sm:$0xff] }
 0x3af   : > { %2470 = vmatprep.subr.bf16.mxu1 %v5724_v8  ;;  %v3098_v8 = vld [vmem:[%s7569_s8 + $0xa0] sm:$0xff] }
 0x3b0   : > { %5211 = vmatpush1.bf16.msra.mxu0 %v5210_v43  ;;  %v3123_v43 = vld [vmem:[%s7569_s8 + $0x168] sm:$0xff] }
 0x3b1   : > { %5213 = vmatprep.subr.bf16.mxu0 %v5212_v47  ;;  %v5248_v45 = vpack.c.bf16 %v3125_v44, %v3123_v43  ;;  %v3122_v47 = vld [vmem:[%s7569_s8 + $0x160] sm:$0xff]  ;;  %v4634_v43 = vld [vmem:[%s7569_s8 + $0x2c8] sm:$0xff]  ;;  %v4636_v44 = vld [vmem:[%s7569_s8 + $0x2d8] sm:$0xff] }
 0x3b2   : > { %2471 = vmatpush1.bf16.msra.mxu1 %v5722_v9  ;;  %v3100_v9 = vld [vmem:[%s7569_s8 + $0xb0] sm:$0xff] }
 0x3b3   : > { %2472 = vmatprep.subr.bf16.mxu1 %v5727_v56  ;;  %v5226_v56 = vpack.c.bf16 %v3100_v9, %v3098_v8 }
 0x3b4   : > { %5215 = vmatpush1.bf16.msra.mxu0 %v5214_v52  ;;  %v3129_v52 = vld [vmem:[%s7569_s8 + $0x198] sm:$0xff] }
 0x3b5   : > { %5217 = vmatprep.subr.bf16.mxu0 %v5216_v57  ;;  %v5254_v57 = vpack.c.bf16 %v3128_v55, %v3126_v54  ;;  %v4637_v55 = vld [vmem:[%s7569_s8 + $0x2e0] sm:$0xff] }
 0x3b6   : > { %2473 = vmatpush1.bf16.msra.mxu1 %v5725_v11  ;;  %v3105_v11 = vld [vmem:[%s7569_s8 + $0xd8] sm:$0xff] }
 0x3b7   : > { %4567 = vmatprep.subr.msk.bf16.mxu1 %vm1788_vm10, %v4565_v12  ;;  %v5228_v12 = vpack.c.bf16 %v3105_v11, %v3103_v10 }
 0x3b8   : > { %5219 = vmatpush1.bf16.msra.mxu0 %v5218_v60  ;;  %v5256_v60 = vpack.c.bf16 %v3133_v59, %v3131_v58  ;;  %v4642_v58 = vld [vmem:[%s7569_s8 + $0x308] sm:$0xff]  ;;  %v4644_v59 = vld [vmem:[%s7569_s8 + $0x318] sm:$0xff] }
 0x3b9   : > { %5221 = vmatprep.subr.bf16.mxu0 %v5220_v63  ;;  %v1893_v63 = vsub.s32 2, %v6211_v31  ;;  %v5300_v61 = vpack.c.bf16 %v4644_v59, %v4642_v58  ;;  %v3137_v58 = vld [vmem:[%s7569_s8 + $0x1d8] sm:$0xff]  ;;  %v4682_v59 = vld [vmem:[%s7569_s8 + $0x448] sm:$0xff] }
 0x3ba   : > { %2475 = vmatpush1.bf16.msra.mxu1 %v2456_v14  ;;  %v3104_v14 = vld [vmem:[%s7569_s8 + $0xd0] sm:$0xff] }
 0x3bb   : > { %2678 = vmatprep.subr.bf16.mxu1 %v5732_v15  ;;  %v5230_v15 = vpack.c.bf16 %v3104_v14, %v3102_v13 }
 0x3bc   : > { %5223 = vmatpush1.bf16.msra.mxu0 %v5222_v3  ;;  %v1894_v3 = vrot.slane %v1672_v0, %v1893_v63  ;;  %v4643_v63 = vld [vmem:[%s7569_s8 + $0x310] sm:$0xff] }
 0x3bd   : > { %4568 = vmatmul.mubr.msk.bf16.vlgmr.msra.gmra.mrb[16].mxu1 %vm1784_vm12, %v6619_v46 }
 0x3be   : > { %2679 = vmatpush1.bf16.msra.mxu1 %v5730_v16  ;;  %2710 = vmatprep.mubr.bf16.mxu1 %v5840_v2  ;;  %v5739_v2 = vld [vmem:[%s7566_s5 + $0x258] ss:$12 sps:$4 sm:$0xff]   ;;  %v3107_v16 = vld [vmem:[%s7569_s8 + $0xe8] sm:$0xff] }
 0x3bf   : > { %2680 = vmatprep.subr.bf16.mxu1 %v5735_v17  ;;  %v3109_v17 = vld [vmem:[%s7569_s8 + $0xf8] sm:$0xff] }
 0x3c2   : > { %2681 = vmatpush1.bf16.msra.mxu1 %v5733_v18  ;;  %v5232_v18 = vpack.c.bf16 %v3109_v17, %v3107_v16  ;;  %v1890_v16 = vrot.slane %v1672_v0, %v675_v33  ;;  %v2774_v33 = vld [vmem:[%s7568_s7] sm:$0x1f] }
 0x3c3   : > { %2682 = vmatprep.subr.bf16.mxu1 %v5738_v20  ;;  %v3106_v20 = vld [vmem:[%s7569_s8 + $0xe0] sm:$0xff] }
 0x3c6   : > { %2683 = vmatpush1.bf16.msra.mxu1 %v5736_v22  ;;  %v3108_v22 = vld [vmem:[%s7569_s8 + $0xf0] sm:$0xff] }
 0x3c7   : > { %2684 = vmatprep.subr.bf16.mxu1 %v5741_v23  ;;  %v5234_v23 = vpack.c.bf16 %v3108_v22, %v3106_v20 }
 0x3ca   : > { %2685 = vmatpush1.bf16.msra.mxu1 %v5739_v2  ;;  %v3111_v2 = vld [vmem:[%s7569_s8 + $0x108] sm:$0xff] }
 0x3cb   : > { %2686 = vmatprep.subr.bf16.mxu1 %v5744_v25  ;;  %v3113_v25 = vld [vmem:[%s7569_s8 + $0x118] sm:$0xff] }
 0x3cc   : > { %v5236_v26 = vpack.c.bf16 %v3113_v25, %v3111_v2 }
 0x3ce   : > { %2687 = vmatpush1.bf16.msra.mxu1 %v5742_v27  ;;  %v3110_v27 = vld [vmem:[%s7569_s8 + $0x100] sm:$0xff] }
 0x3cf   : > { %4610 = vmatprep.subr.msk.bf16.mxu1 %vm1788_vm10, %v4608_v28  ;;  %v3112_v28 = vld [vmem:[%s7569_s8 + $0x110] sm:$0xff] }
 0x3d0   : > { %v5238_v30 = vpack.c.bf16 %v3112_v28, %v3110_v27 }
 0x3d2   : > { %2689 = vmatpush1.bf16.msra.mxu1 %v2670_v24  ;;  %v3115_v24 = vld [vmem:[%s7569_s8 + $0x128] sm:$0xff] }
 0x3d3   : > { %v5240_v21 = vpack.c.bf16 %v3117_v19, %v3115_v24  ;;  %v4626_v24 = vld [vmem:[%s7569_s8 + $0x288] sm:$0xff]  ;;  %v4628_v19 = vld [vmem:[%s7569_s8 + $0x298] sm:$0xff] }
 0x3d4   : > { %v5284_v34 = vpack.c.bf16 %v4628_v19, %v4626_v24 }
 0x3d5   : > { %4611 = vmatmul.mubr.msk.bf16.vlgmr.msra.gmra.mrb[16].mxu1 %vm1784_vm12, %v2577_v6  ;;  %v3101_v6 = vld [vmem:[%s7569_s8 + $0xb8] sm:$0xff] }
 0x3d6   : > { %2852 = vmatprep.mubr.f32.mxu1 %v5841_v29  ;;  %v5224_v7 = vpack.c.bf16 %v3101_v6, %v3099_v4 }
 0x3d8   : > { %5225 = vmatprep.subr.bf16.mxu0 %v5224_v7 }
 0x3d9   : > { %5227 = vmatpush1.bf16.msra.mxu0 %v5226_v56 }
 0x3da   : > { %5229 = vmatprep.subr.bf16.mxu0 %v5228_v12 }
 0x3dd   : > { %5231 = vmatpush1.bf16.msra.mxu0 %v5230_v15  ;;  %v1886_v15 = vrot.slane %v1672_v0, %v671_v32  ;;  %v4646_v0 = vld [vmem:[%s7569_s8 + $0x328] sm:$0xff] }
 0x3de   : > { %5233 = vmatprep.subr.bf16.mxu0 %v5232_v18 }
 0x3e1   : > { %5235 = vmatpush1.bf16.msra.mxu0 %v5234_v23 }
 0x3e2   : > { %5237 = vmatprep.subr.bf16.mxu0 %v5236_v26 }
 0x3e5   : > { %5239 = vmatpush1.bf16.msra.mxu0 %v5238_v30  ;;  %v4661_v30 = vld [vmem:[%s7569_s8 + $0x3a0] sm:$0xff] }
 0x3e6   : > { %5241 = vmatprep.subr.bf16.mxu0 %v5240_v21  ;;  %v4618_v21 = vld [vmem:[%s7568_s7 + $0x8] sm:$0x1f] }
 0x3e9   : > { %5243 = vmatpush1.bf16.msra.mxu0 %v5242_v36  ;;  %v4627_v36 = vld [vmem:[%s7569_s8 + $0x290] sm:$0xff] }
 0x3ea   : > { %5245 = vmatprep.subr.bf16.mxu0 %v5244_v39  ;;  %v5286_v39 = vpack.c.bf16 %v4627_v36, %v4625_v35  ;;  %v4670_v35 = vld [vmem:[%s7569_s8 + $0x3e8] sm:$0xff]  ;;  %v4672_v36 = vld [vmem:[%s7569_s8 + $0x3f8] sm:$0xff] }
 0x3eb   : > { %v5328_v38 = vpack.c.bf16 %v4672_v36, %v4670_v35 }
 0x3ed   : > { %5247 = vmatpush1.bf16.msra.mxu0 %v5246_v42  ;;  %v4631_v42 = vld [vmem:[%s7569_s8 + $0x2b0] sm:$0xff] }
 0x3ee   : > { %5249 = vmatprep.subr.bf16.mxu0 %v5248_v45  ;;  %v5290_v45 = vpack.c.bf16 %v4631_v42, %v4629_v41  ;;  %v4674_v41 = vld [vmem:[%s7569_s8 + $0x408] sm:$0xff]  ;;  %v4676_v42 = vld [vmem:[%s7569_s8 + $0x418] sm:$0xff] }
 0x448   : > { %v6778_v46 = vpop.f32.mrb[20].mxu1 }
 0x449   : > { %v4896_v49 = vpop.f32.mrb[21].mxu1  ;;  %v1900_v4 = vadd.f32 %v1894_v3, %v6778_v46 }
 0x44a   : > { %v6786_v51 = vpop.f32.mrb[22].mxu1  ;;  %v5250_v49 = vpack.c.bf16 %v3124_v48, %v3122_v47  ;;  %v5292_v47 = vpack.c.bf16 %v4636_v44, %v4634_v43  ;;  %v4633_v48 = vld [vmem:[%s7569_s8 + $0x2c0] sm:$0xff]  ;;  %v5332_v44 = vpack.c.bf16 %v4676_v42, %v4674_v41  ;;  %v3148_v41 = vld [vmem:[%s7569_s8 + $0x230] sm:$0xff] }
 0x44b   : > { %v4897_v53 = vpop.f32.mrb[23].mxu1  ;;  %v1903_v7 = vadd.f32 %v1894_v3, %v6786_v51  ;;  %v5302_v3 = vpack.c.bf16 %v4643_v63, %v4641_v62  ;;  %v3134_v62 = vld [vmem:[%s7569_s8 + $0x1c0] sm:$0xff]  ;;  %v3136_v63 = vld [vmem:[%s7569_s8 + $0x1d0] sm:$0xff] }
 0x44c   : > { %v5252_v53 = vpack.c.bf16 %v3129_v52, %v3127_v50  ;;  %5251 = vmatpush1.bf16.msra.mxu0 %v5250_v49  ;;  %v4635_v49 = vld [vmem:[%s7569_s8 + $0x2d0] sm:$0xff]  ;;  %v4638_v50 = vld [vmem:[%s7569_s8 + $0x2e8] sm:$0xff]  ;;  %v4640_v52 = vld [vmem:[%s7569_s8 + $0x2f8] sm:$0xff] }
 0x44d   : > { %v5296_v54 = vpack.c.bf16 %v4640_v52, %v4638_v50 }
 0x44e   : > { %5253 = vmatprep.subr.bf16.mxu0 %v5252_v53  ;;  %v5294_v53 = vpack.c.bf16 %v4635_v49, %v4633_v48  ;;  %v4678_v48 = vld [vmem:[%s7569_s8 + $0x428] sm:$0xff]  ;;  %v4680_v49 = vld [vmem:[%s7569_s8 + $0x438] sm:$0xff] }
 0x44f   : > { %v5336_v52 = vpack.c.bf16 %v4680_v49, %v4678_v48  ;;  %v3153_v49 = vld [vmem:[%s7569_s8 + $0x258] sm:$0xff] }
 0x450   : > { %5255 = vmatpush1.bf16.msra.mxu0 %v5254_v57  ;;  %v4639_v57 = vld [vmem:[%s7569_s8 + $0x2f0] sm:$0xff] }
 0x451   : > { %5257 = vmatprep.subr.bf16.mxu0 %v5256_v60  ;;  %v5298_v60 = vpack.c.bf16 %v4639_v57, %v4637_v55  ;;  %v3135_v57 = vld [vmem:[%s7569_s8 + $0x1c8] sm:$0xff] }
 0x454   : > { %5259 = vmatpush1.bf16.msra.mxu0 %v5258_v1  ;;  %v4648_v1 = vld [vmem:[%s7569_s8 + $0x338] sm:$0xff] }
 0x47e   : > { %v2755_v6 = vpop.f32.mrb[8].mxu0 }
 0x47f   : > { %v5413_v8 = vadd.f32 %v2755_v6, %v1900_v4  ;;  %v4960_v9 = vpop.f32.mrb[9].mxu0  ;;  %v5304_v4 = vpack.c.bf16 %v4648_v1, %v4646_v0  ;;  %v4645_v6 = vld [vmem:[%s7569_s8 + $0x320] sm:$0xff]  ;;  %v5262_v1 = vpack.c.bf16 %v3136_v63, %v3134_v62  ;;  %v4699_v63 = vld [vmem:[%s7569_s8 + $0x4d0] sm:$0xff] }
 0x480   : > { %v2758_v56 = vpop.f32.mrb[10].mxu0  ;;  %v4652_v9 = vld [vmem:[%s7569_s8 + $0x358] sm:$0xff]  ;;  %v4697_v62 = vld [vmem:[%s7569_s8 + $0x4c0] sm:$0xff] }
 0x481   : > { %v5415_v10 = vadd.f32 %v2758_v56, %v1903_v7  ;;  %v4961_v11 = vpop.f32.mrb[11].mxu0  ;;  %v2770_v12 = vmax.f32 %v5413_v8, 0.0  ;;  %v4647_v7 = vld [vmem:[%s7569_s8 + $0x330] sm:$0xff]  ;;  %v4650_v8 = vld [vmem:[%s7569_s8 + $0x348] sm:$0xff] }
 0x482   : > { %v5306_v56 = vpack.c.bf16 %v4647_v7, %v4645_v6  ;;  %v4649_v11 = vld [vmem:[%s7569_s8 + $0x340] sm:$0xff]  ;;  %v3139_v7 = vld [vmem:[%s7569_s8 + $0x1e8] sm:$0xff] }
 0x483   : > { %v2773_v13 = vmax.f32 %v5415_v10, 0.0  ;;  %v5308_v10 = vpack.c.bf16 %v4652_v9, %v4650_v8  ;;  %v3141_v8 = vld [vmem:[%s7569_s8 + $0x1f8] sm:$0xff]  ;;  %v4686_v9 = vld [vmem:[%s7569_s8 + $0x468] sm:$0xff] }
 0x485   : > { %v5191_v14 = vpack.c.bf16 %v2773_v13, %v2770_v12  ;;  %v4651_v12 = vld [vmem:[%s7569_s8 + $0x350] sm:$0xff]  ;;  %v4654_v13 = vld [vmem:[%s7569_s8 + $0x368] sm:$0xff] }
 0x4a8   : > { %v2712_v17 = vpop.f32.mrb[16].mxu1 }
 0x4a9   : > { %v5408_v18 = vadd.f32 %v2712_v17, %v1886_v15  ;;  %v2714_v46 = vpop.f32.mrb[17].mxu1  ;;  %v4653_v17 = vld [vmem:[%s7569_s8 + $0x360] sm:$0xff] }
 0x4aa   : > { %v5409_v20 = vadd.f32 %v2714_v46, %v1890_v16  ;;  %v2716_v22 = vpop.f32.mrb[18].mxu1  ;;  %v4658_v46 = vld [vmem:[%s7569_s8 + $0x388] sm:$0xff] }
 0x4ab   : > { %v5410_v51 = vadd.f32 %v2716_v22, %v1886_v15  ;;  %v2718_v23 = vpop.f32.mrb[19].mxu1  ;;  %v2768_v25 = vmax.f32 %v5408_v18, 0.0  ;;  %v5310_v15 = vpack.c.bf16 %v4651_v12, %v4649_v11  ;;  %v4655_v18 = vld [vmem:[%s7569_s8 + $0x370] sm:$0xff]  ;;  %v3138_v11 = vld [vmem:[%s7569_s8 + $0x1e0] sm:$0xff] }
 0x4ac   : > { %v5411_v2 = vadd.f32 %v2718_v23, %v1890_v16  ;;  %v2769_v27 = vmax.f32 %v5409_v20, 0.0  ;;  %v4660_v20 = vld [vmem:[%s7569_s8 + $0x398] sm:$0xff]  ;;  %v5314_v22 = vpack.c.bf16 %v4655_v18, %v4653_v17  ;;  %v4657_v23 = vld [vmem:[%s7569_s8 + $0x380] sm:$0xff]  ;;  %v3140_v12 = vld [vmem:[%s7569_s8 + $0x1f0] sm:$0xff] }
 0x4ad   : > { %v2771_v26 = vmax.f32 %v5410_v51, 0.0  ;;  %v5316_v51 = vpack.c.bf16 %v4660_v20, %v4658_v46  ;;  %v3143_v18 = vld [vmem:[%s7569_s8 + $0x208] sm:$0xff]  ;;  %v3145_v46 = vld [vmem:[%s7569_s8 + $0x218] sm:$0xff] }
 0x4ae   : > { %v2772_v28 = vmax.f32 %v5411_v2, 0.0  ;;  %v4659_v2 = vld [vmem:[%s7569_s8 + $0x390] sm:$0xff]  ;;  %v4690_v20 = vld [vmem:[%s7569_s8 + $0x488] sm:$0xff] }
 0x4af   : > { %v5187_v31 = vpack.c.bf16 %v2771_v26, %v2768_v25  ;;  %v4662_v25 = vld [vmem:[%s7569_s8 + $0x3a8] sm:$0xff]  ;;  %v4664_v26 = vld [vmem:[%s7569_s8 + $0x3b8] sm:$0xff] }
 0x4b0   : > { %v5184_v32 = vpack.c.bf16 %v2772_v28, %v2769_v27  ;;  %v5318_v27 = vpack.c.bf16 %v4659_v2, %v4657_v23  ;;  %v5320_v28 = vpack.c.bf16 %v4664_v26, %v4662_v25 }
 0x4b2   : > { %5186 = vmatprep.subr.msk.bf16.mxu1 %vm6932_vm13, %v5184_v32 }
 0x4b3   : > { %5189 = vmatpush1.bf16.msk.msra.mxu1 %vm6932_vm13, %v5187_v31 }
 0x4b4   : > { %5190 = vmatprep.subr.bf16.mxu1 %v5843_v5 }
 0x4b6   : > { %4615 = vmatmul.mubr.msk.f32.vlgmr.msra.gmra.mrb[24].mxu1 %vm2775_vm14, %v2774_v33 }
 0x4b7   : > { %5193 = vmatpush3.bf16.msk.msra.mxu1 %vm6932_vm13, %v5191_v14  ;;  %4966 = vmatprep.mubr.msk.f32.mxu1 %vm5844_vm11, %v5841_v29 }
 0x4b8   : > { %5196 = vmatprep.subr.msk.bf16.mxu1 %vm6932_vm13, %v5184_v32  ;;  %v4666_v32 = vld [vmem:[%s7569_s8 + $0x3c8] sm:$0xff] }
 0x4ba   : > { %4967 = vmatmul.mubr.msk.f32.vlgmr.msra.gmra.mrb[26].mxu1 %vm2775_vm14, %v2774_v33  ;;  %v4668_v33 = vld [vmem:[%s7569_s8 + $0x3d8] sm:$0xff] }
 0x4bb   : > { %5199 = vmatpush1.bf16.msk.msra.mxu1 %vm6932_vm13, %v5187_v31  ;;  %2998 = vmatprep.mubr.f32.mxu1 %v5841_v29  ;;  %v4663_v31 = vld [vmem:[%s7569_s8 + $0x3b0] sm:$0xff]  ;;  %v5324_v19 = vpack.c.bf16 %v4668_v33, %v4666_v32  ;;  %v3147_v33 = vld [vmem:[%s7569_s8 + $0x228] sm:$0xff] }
 0x4bc   : > { %5200 = vmatprep.subr.bf16.mxu1 %v5843_v5  ;;  %v5322_v24 = vpack.c.bf16 %v4663_v31, %v4661_v30  ;;  %v3144_v30 = vld [vmem:[%s7569_s8 + $0x210] sm:$0xff]  ;;  %v4689_v31 = vld [vmem:[%s7569_s8 + $0x480] sm:$0xff] }
 0x4bd   : > { %v4691_v32 = vld [vmem:[%s7569_s8 + $0x490] sm:$0xff] }
 0x4be   : > { %4621 = vmatmul.mubr.msk.f32.vlgmr.msra.gmra.mrb[28].mxu1 %vm2775_vm14, %v4618_v21 }
 0x4bf   : > { %5203 = vmatpush3.bf16.msk.msra.mxu1 %vm6932_vm13, %v5191_v14  ;;  %4973 = vmatprep.mubr.msk.f32.mxu1 %vm5844_vm11, %v5841_v29  ;;  %v4656_v14 = vld [vmem:[%s7569_s8 + $0x378] sm:$0xff] }
 0x4c0   : > { %5285 = vmatprep.subr.bf16.mxu1 %v5284_v34  ;;  %v5312_v16 = vpack.c.bf16 %v4656_v14, %v4654_v13  ;;  %v4667_v34 = vld [vmem:[%s7569_s8 + $0x3d0] sm:$0xff]  ;;  %v5266_v14 = vpack.c.bf16 %v3140_v12, %v3138_v11  ;;  %v4701_v11 = vld [vmem:[%s7569_s8 + $0x4e0] sm:$0xff] }
 0x4c1   : > { %v4703_v12 = vld [vmem:[%s7569_s8 + $0x4f0] sm:$0xff] }
 0x4c2   : > { %4974 = vmatmul.mubr.msk.f32.vlgmr.msra.gmra.mrb[30].mxu1 %vm2775_vm14, %v4618_v21  ;;  %v4665_v21 = vld [vmem:[%s7569_s8 + $0x3c0] sm:$0xff] }
 0x4c3   : > { %5287 = vmatpush1.bf16.msra.mxu1 %v5286_v39  ;;  %v5326_v37 = vpack.c.bf16 %v4667_v34, %v4665_v21  ;;  %v4669_v39 = vld [vmem:[%s7569_s8 + $0x3e0] sm:$0xff]  ;;  %v4694_v21 = vld [vmem:[%s7569_s8 + $0x4a8] sm:$0xff]  ;;  %v4696_v34 = vld [vmem:[%s7569_s8 + $0x4b8] sm:$0xff] }
 0x4c4   : > { %5289 = vmatprep.subr.bf16.mxu1 %v5288_v40  ;;  %v4671_v40 = vld [vmem:[%s7569_s8 + $0x3f0] sm:$0xff] }
 0x4c5   : > { %v5330_v43 = vpack.c.bf16 %v4671_v40, %v4669_v39  ;;  %v5350_v39 = vpack.c.bf16 %v4691_v32, %v4689_v31  ;;  %v3146_v40 = vld [vmem:[%s7569_s8 + $0x220] sm:$0xff]  ;;  %v3976_v31 = vld [vmem:[%s7572_s11 + $0x18] sm:$0xff] }
 0x4c7   : > { %5291 = vmatpush1.bf16.msra.mxu1 %v5290_v45  ;;  %v4673_v45 = vld [vmem:[%s7569_s8 + $0x400] sm:$0xff] }
 0x4c8   : > { %5293 = vmatprep.subr.bf16.mxu1 %v5292_v47  ;;  %v4675_v47 = vld [vmem:[%s7569_s8 + $0x410] sm:$0xff] }
 0x4c9   : > { %v5334_v50 = vpack.c.bf16 %v4675_v47, %v4673_v45  ;;  %v4695_v45 = vld [vmem:[%s7569_s8 + $0x4b0] sm:$0xff]  ;;  %v3151_v47 = vld [vmem:[%s7569_s8 + $0x248] sm:$0xff] }
 0x4cb   : > { %5295 = vmatpush1.bf16.msra.mxu1 %v5294_v53  ;;  %v4677_v53 = vld [vmem:[%s7569_s8 + $0x420] sm:$0xff] }
 0x4cc   : > { %5297 = vmatprep.subr.bf16.mxu1 %v5296_v54  ;;  %v4679_v54 = vld [vmem:[%s7569_s8 + $0x430] sm:$0xff] }
 0x4cd   : > { %v5338_v55 = vpack.c.bf16 %v4679_v54, %v4677_v53 }
 0x4cf   : > { %5299 = vmatpush1.bf16.msra.mxu1 %v5298_v60  ;;  %v5260_v60 = vpack.c.bf16 %v3137_v58, %v3135_v57  ;;  %v3150_v58 = vld [vmem:[%s7569_s8 + $0x240] sm:$0xff] }
 0x4d0   : > { %5301 = vmatprep.subr.bf16.mxu1 %v5300_v61  ;;  %v4684_v61 = vld [vmem:[%s7569_s8 + $0x458] sm:$0xff] }
 0x4d1   : > { %v5340_v0 = vpack.c.bf16 %v4684_v61, %v4682_v59  ;;  %5261 = vmatprep.subr.bf16.mxu0 %v5260_v60  ;;  %v3152_v59 = vld [vmem:[%s7569_s8 + $0x250] sm:$0xff]  ;;  %v5276_v60 = vpack.c.bf16 %v3153_v49, %v3151_v47  ;;  %v5752_v47 = vld [vmem:[%s7570_s9 + $0x28] sm:$0xff]  }
 0x4d2   : > { %5263 = vmatpush1.bf16.msra.mxu0 %v5262_v1  ;;  %v3157_v1 = vld [vmem:[%s7569_s8 + $0x278] sm:$0xff]  ;;  %v5753_v49 = vld [vmem:[%s7570_s9 + $0x30] sm:$0xff]  }
 0x4d3   : > { %5303 = vmatpush1.bf16.msra.mxu1 %v5302_v3  ;;  %v4681_v3 = vld [vmem:[%s7569_s8 + $0x440] sm:$0xff] }
 0x4d4   : > { %5305 = vmatprep.subr.bf16.mxu1 %v5304_v4  ;;  %v4683_v4 = vld [vmem:[%s7569_s8 + $0x450] sm:$0xff] }
 0x4d5   : > { %v5342_v6 = vpack.c.bf16 %v4683_v4, %v4681_v3  ;;  %v4702_v3 = vld [vmem:[%s7569_s8 + $0x4e8] sm:$0xff]  ;;  %v4704_v4 = vld [vmem:[%s7569_s8 + $0x4f8] sm:$0xff] }
 0x4d7   : > { %5307 = vmatpush1.bf16.msra.mxu1 %v5306_v56  ;;  %v5264_v56 = vpack.c.bf16 %v3141_v8, %v3139_v7  ;;  %v5358_v7 = vpack.c.bf16 %v4699_v63, %v4697_v62  ;;  %v3154_v8 = vld [vmem:[%s7569_s8 + $0x260] sm:$0xff] }
 0x4d8   : > { %5309 = vmatprep.subr.bf16.mxu1 %v5308_v10  ;;  %v4688_v10 = vld [vmem:[%s7569_s8 + $0x478] sm:$0xff]  ;;  %v5763_v63 = vld [vmem:[%s7570_s9 + $0x80] sm:$0xff]  }
 0x4d9   : > { %v5344_v13 = vpack.c.bf16 %v4688_v10, %v4686_v9  ;;  %5265 = vmatprep.subr.bf16.mxu0 %v5264_v56  ;;  %v5360_v56 = vpack.c.bf16 %v4704_v4, %v4702_v3  ;;  %v3156_v10 = vld [vmem:[%s7569_s8 + $0x270] sm:$0xff]  ;;  %v5766_v3 = vld [vmem:[%s7570_s9 + $0x98] sm:$0xff]   ;;  %v5767_v4 = vld [vmem:[%s7570_s9 + $0xa0] sm:$0xff]  }
 0x4da   : > { %5267 = vmatpush1.bf16.msra.mxu0 %v5266_v14  ;;  %v5362_v14 = vpack.c.bf16 %v4703_v12, %v4701_v11  ;;  %v3985_v11 = vld [vmem:[%s7572_s11 + $0x60] sm:$0xff]  ;;  %v3986_v12 = vld [vmem:[%s7572_s11 + $0x68] sm:$0xff] }
 0x4db   : > { %5311 = vmatpush1.bf16.msra.mxu1 %v5310_v15  ;;  %v4685_v15 = vld [vmem:[%s7569_s8 + $0x460] sm:$0xff] }
 0x4dc   : > { %5313 = vmatprep.subr.bf16.mxu1 %v5312_v16  ;;  %v4687_v16 = vld [vmem:[%s7569_s8 + $0x470] sm:$0xff] }
 0x4dd   : > { %v5346_v17 = vpack.c.bf16 %v4687_v16, %v4685_v15  ;;  %v5747_v15 = vld [vmem:[%s7570_s9] sm:$0xff]   ;;  %v5748_v16 = vld [vmem:[%s7570_s9 + $0x8] sm:$0xff]  }
 0x4df   : > { %5315 = vmatpush1.bf16.msra.mxu1 %v5314_v22  ;;  %v5268_v22 = vpack.c.bf16 %v3145_v46, %v3143_v18  ;;  %v5750_v18 = vld [vmem:[%s7570_s9 + $0x18] sm:$0xff]   ;;  %v5751_v46 = vld [vmem:[%s7570_s9 + $0x20] sm:$0xff]  }
 0x4e0   : > { %5317 = vmatprep.subr.bf16.mxu1 %v5316_v51  ;;  %v4692_v51 = vld [vmem:[%s7569_s8 + $0x498] sm:$0xff] }
 0x4e1   : > { %v5348_v23 = vpack.c.bf16 %v4692_v51, %v4690_v20  ;;  %5269 = vmatprep.subr.bf16.mxu0 %v5268_v22 }
 0x4e3   : > { %5319 = vmatpush1.bf16.msra.mxu1 %v5318_v27 }
 0x4e4   : > { %5321 = vmatprep.subr.bf16.mxu1 %v5320_v28  ;;  %v3142_v28 = vld [vmem:[%s7569_s8 + $0x200] sm:$0xff] }
 0x4e7   : > { %5323 = vmatpush1.bf16.msra.mxu1 %v5322_v24 }
 0x4e8   : > { %5325 = vmatprep.subr.bf16.mxu1 %v5324_v19  ;;  %v3149_v19 = vld [vmem:[%s7569_s8 + $0x238] sm:$0xff] }
 0x4e9   : > { %v5272_v42 = vpack.c.bf16 %v3149_v19, %v3147_v33  ;;  %v3977_v33 = vld [vmem:[%s7572_s11 + $0x20] sm:$0xff] }
 0x4eb   : > { %5327 = vmatpush1.bf16.msra.mxu1 %v5326_v37 }
 0x4ec   : > { %5329 = vmatprep.subr.bf16.mxu1 %v5328_v38  ;;  %v5270_v38 = vpack.c.bf16 %v3144_v30, %v3142_v28  ;;  %v3975_v28 = vld [vmem:[%s7572_s11 + $0x10] sm:$0xff] }
 0x4ed   : > { %v5368_v32 = vpack.c.bf16 %v3976_v31, %v3975_v28  ;;  %v4070_v28 = vld [vmem:[%s7574_s13 + $0x20] sm:$0xff] }
 0x4ef   : > { %5331 = vmatpush1.bf16.msra.mxu1 %v5330_v43  ;;  %v5352_v43 = vpack.c.bf16 %v4696_v34, %v4694_v21  ;;  %v3979_v21 = vld [vmem:[%s7572_s11 + $0x30] sm:$0xff]  ;;  %v3980_v34 = vld [vmem:[%s7572_s11 + $0x38] sm:$0xff] }
 0x4f0   : > { %5333 = vmatprep.subr.bf16.mxu1 %v5332_v44  ;;  %v4693_v44 = vld [vmem:[%s7569_s8 + $0x4a0] sm:$0xff] }
 0x4f1   : > { %v5354_v57 = vpack.c.bf16 %v4695_v45, %v4693_v44 }
 0x4f3   : > { %5335 = vmatpush1.bf16.msra.mxu1 %v5334_v50  ;;  %v4698_v50 = vld [vmem:[%s7569_s8 + $0x4c8] sm:$0xff] }
 0x4f4   : > { %5337 = vmatprep.subr.bf16.mxu1 %v5336_v52  ;;  %v4700_v52 = vld [vmem:[%s7569_s8 + $0x4d8] sm:$0xff] }
 0x4f5   : > { %v5356_v61 = vpack.c.bf16 %v4700_v52, %v4698_v50  ;;  %v5754_v50 = vld [vmem:[%s7570_s9 + $0x38] sm:$0xff]   ;;  %v5755_v52 = vld [vmem:[%s7570_s9 + $0x40] sm:$0xff]  }
 0x4f7   : > { %5339 = vmatpush1.bf16.msra.mxu1 %v5338_v55  ;;  %v5274_v55 = vpack.c.bf16 %v3148_v41, %v3146_v40  ;;  %v3984_v40 = vld [vmem:[%s7572_s11 + $0x58] sm:$0xff] }
 0x4f8   : > { %5341 = vmatprep.subr.bf16.mxu1 %v5340_v0  ;;  %v3155_v0 = vld [vmem:[%s7569_s8 + $0x268] sm:$0xff] }
 0x4f9   : > { %v5280_v9 = vpack.c.bf16 %v3157_v1, %v3155_v0  ;;  %v5764_v0 = vld [vmem:[%s7570_s9 + $0x88] sm:$0xff]   ;;  %v5765_v1 = vld [vmem:[%s7570_s9 + $0x90] sm:$0xff]  }
 0x4fb   : > { %5343 = vmatpush1.bf16.msra.mxu1 %v5342_v6  ;;  %v5278_v6 = vpack.c.bf16 %v3152_v59, %v3150_v58  ;;  %v5759_v58 = vld [vmem:[%s7570_s9 + $0x60] sm:$0xff]   ;;  %v5760_v59 = vld [vmem:[%s7570_s9 + $0x68] sm:$0xff]  }
 0x4fc   : > { %5345 = vmatprep.subr.bf16.mxu1 %v5344_v13  ;;  %v5282_v13 = vpack.c.bf16 %v3156_v10, %v3154_v8  ;;  %v5769_v8 = vld [vmem:[%s7570_s9 + $0xb0] sm:$0xff]  }
 0x4ff   : > { %5347 = vmatpush1.bf16.msra.mxu1 %v5346_v17  ;;  %v5749_v17 = vld [vmem:[%s7570_s9 + $0x10] sm:$0xff]  }
 0x500   : > { %5349 = vmatprep.subr.bf16.mxu1 %v5348_v23 }
 0x589   : > { %v2854_v2 = vpop.f32.mrb[24].mxu1 }
 0x58a   : > { %v2856_v25 = vpop.f32.mrb[25].mxu1 }
 0x58d   : > { %v2925_v26 = vpop.f32.mrb[26].mxu1 }
 0x58e   : > { %v4968_v27 = vpop.f32.mrb[27].mxu1 }
 0x58f   : > { %v3974_v27 = vld [vmem:[%s7572_s11 + $0x8] sm:$0xff] }
 0x591   : > { %v3000_v24 = vpop.f32.mrb[28].mxu1 }
 0x592   : > { %v3075_v35 = vmax.f32 %v2854_v2, %v3000_v24  ;;  %v3002_v36 = vpop.f32.mrb[29].mxu1  ;;  %v3978_v24 = vld [vmem:[%s7572_s11 + $0x28] sm:$0xff] }
 0x593   : > { %v3076_v37 = vmax.f32 %v2856_v25, %v3002_v36  ;;  %v5371_v19 = vpack.c.bf16 %v3978_v24, %v3977_v33  ;;  %v3981_v36 = vld [vmem:[%s7572_s11 + $0x40] sm:$0xff]  ;;  %v4073_v33 = vld [vmem:[%s7574_s13 + $0x38] sm:$0xff] }
 0x595   : > { %v3071_v48 = vpop.f32.mrb[30].mxu1  ;;  %3226 = vmatprep.mubr.f32.mxu0 %v3076_v37  ;;  %3449 = vmatprep.mubr.f32.mxu1 %v3076_v37  ;;  %v3982_v37 = vld [vmem:[%s7572_s11 + $0x48] sm:$0xff] }
 0x596   : > { %v3077_v53 = vmax.f32 %v2925_v26, %v3071_v48  ;;  %3227 = vmatmul.mubr.f32.vlgmr.msra.gmra.mrb[12].mxu0 %v3075_v35  ;;  %3450 = vmatmul.mubr.f32.vlgmr.msra.gmra.mrb[32].mxu1 %v3075_v35  ;;  %v4975_v54 = vpop.f32.mrb[31].mxu1  ;;  %v3973_v26 = vld [vmem:[%s7572_s11] sm:$0xff]  ;;  %v5374_v35 = vpack.c.bf16 %v3980_v34, %v3979_v21  ;;  %v4075_v21 = vld [vmem:[%s7574_s13 + $0x48] sm:$0xff] }
 0x597   : > { %5271 = vmatpush1.bf16.msra.mxu0 %v5270_v38  ;;  %5351 = vmatpush1.bf16.msra.mxu1 %v5350_v39  ;;  %v5365_v30 = vpack.c.bf16 %v3974_v27, %v3973_v26  ;;  %v5377_v38 = vpack.c.bf16 %v3982_v37, %v3981_v36  ;;  %v3983_v39 = vld [vmem:[%s7572_s11 + $0x50] sm:$0xff]  ;;  %v4069_v26 = vld [vmem:[%s7574_s13 + $0x18] sm:$0xff] }
 0x598   : > { %5273 = vmatprep.subr.bf16.mxu0 %v5272_v42  ;;  %5353 = vmatprep.subr.bf16.mxu1 %v5352_v43  ;;  %v5380_v41 = vpack.c.bf16 %v3984_v40, %v3983_v39  ;;  %v5757_v54 = vld [vmem:[%s7570_s9 + $0x50] sm:$0xff]  }
 0x599   : > { %3297 = vmatprep.mubr.f32.mxu0 %v5841_v29  ;;  %3520 = vmatprep.mubr.f32.mxu1 %v5841_v29 }
 0x59b   : > { %5275 = vmatpush1.bf16.msra.mxu0 %v5274_v55  ;;  %5355 = vmatpush1.bf16.msra.mxu1 %v5354_v57  ;;  %v5758_v57 = vld [vmem:[%s7570_s9 + $0x58] sm:$0xff]  }
 0x59c   : > { %5277 = vmatprep.subr.bf16.mxu0 %v5276_v60  ;;  %5357 = vmatprep.subr.bf16.mxu1 %v5356_v61  ;;  %v5761_v60 = vld [vmem:[%s7570_s9 + $0x70] sm:$0xff]   ;;  %v5762_v61 = vld [vmem:[%s7570_s9 + $0x78] sm:$0xff]  }
 0x59f   : > { %5279 = vmatpush1.bf16.msra.mxu0 %v5278_v6  ;;  %5359 = vmatpush1.bf16.msra.mxu1 %v5358_v7  ;;  %v5768_v7 = vld [vmem:[%s7570_s9 + $0xa8] sm:$0xff]  }
 0x5a0   : > { %5281 = vmatprep.subr.bf16.mxu0 %v5280_v9  ;;  %5361 = vmatprep.subr.bf16.mxu1 %v5360_v56  ;;  %v5770_v9 = vld [vmem:[%s7570_s9 + $0xb8] sm:$0xff]   ;;  %v5771_v56 = vld [vmem:[%s7570_s9 + $0xc0] sm:$0xff]  }
 0x5a3   : > { %5283 = vmatpush1.bf16.msra.mxu0 %v5282_v13  ;;  %5363 = vmatpush1.bf16.msra.mxu1 %v5362_v14  ;;  %v5383_v13 = vpack.c.bf16 %v3986_v12, %v3985_v11  ;;  %v3987_v14 = vld [vmem:[%s7572_s11 + $0x70] sm:$0xff] }
 0x5a4   : > { %4976 = vmatprep.subr.bf16.mxu0 %v5841_v29  ;;  %5364 = vmatprep.subr.bf16.mxu1 %v5843_v5 }
 0x5a6   : > { %4624 = vmatmul.mubr.msk.f32.vlgmr.msra.gmra.mrb[12].mxu0 %vm3158_vm15, %v3077_v53  ;;  %4705 = vmatmul.mubr.msk.f32.vlgmr.msra.gmra.mrb[32].mxu1 %vm3158_vm15, %v3077_v53  ;;  %v5756_v53 = vld [vmem:[%s7570_s9 + $0x48] sm:$0xff]  }
 0x5a7   : > { %4986 = vmatprep.mubr.msk.bf16.mxu0 %vm5844_vm11, %v5841_v29  ;;  %5076 = vmatprep.mubr.msk.f32.mxu1 %vm5844_vm11, %v5841_v29 }
 0x5a8   : > { %4977 = vmatpush3.bf16.msra.mxu0 %v5747_v15  ;;  %5366 = vmatpush3.bf16.msra.mxu1 %v5365_v30  ;;  %v3539_v15 = vld [vmem:[%s7571_s10] sm:$0x1]  ;;  %v4071_v30 = vld [vmem:[%s7574_s13 + $0x28] sm:$0xff] }
 0x5a9   : > { %4978 = vmatprep.subr.bf16.mxu0 %v5841_v29  ;;  %5367 = vmatprep.subr.bf16.mxu1 %v5843_v5  ;;  %v5392_v31 = vpack.c.bf16 %v4071_v30, %v4070_v28 }
 0x5ac   : > { %4979 = vmatpush3.bf16.msra.mxu0 %v5748_v16  ;;  %5369 = vmatpush3.bf16.msra.mxu1 %v5368_v32  ;;  %v4066_v16 = vld [vmem:[%s7574_s13] sm:$0xff]  ;;  %v4072_v32 = vld [vmem:[%s7574_s13 + $0x30] sm:$0xff] }
 0x5ad   : > { %4980 = vmatprep.subr.bf16.mxu0 %v5841_v29  ;;  %5370 = vmatprep.subr.bf16.mxu1 %v5843_v5  ;;  %v5395_v24 = vpack.c.bf16 %v4073_v33, %v4072_v32 }
 0x5b0   : > { %4981 = vmatpush3.bf16.msra.mxu0 %v5749_v17  ;;  %5372 = vmatpush3.bf16.msra.mxu1 %v5371_v19  ;;  %v4067_v17 = vld [vmem:[%s7574_s13 + $0x8] sm:$0xff]  ;;  %v4074_v19 = vld [vmem:[%s7574_s13 + $0x40] sm:$0xff] }
 0x5b1   : > { %4982 = vmatprep.subr.bf16.mxu0 %v5841_v29  ;;  %5373 = vmatprep.subr.bf16.mxu1 %v5843_v5  ;;  %v5398_v34 = vpack.c.bf16 %v4075_v21, %v4074_v19 }
 0x5b4   : > { %4983 = vmatpush3.bf16.msra.mxu0 %v5750_v18  ;;  %5375 = vmatpush3.bf16.msra.mxu1 %v5374_v35  ;;  %v4076_v35 = vld [vmem:[%s7574_s13 + $0x50] sm:$0xf] }
 0x5b5   : > { %4984 = vmatprep.subr.bf16.mxu0 %v5841_v29  ;;  %5376 = vmatprep.subr.bf16.mxu1 %v5843_v5 }
 0x5b8   : > { %4985 = vmatpush3.bf16.msra.mxu0 %v5751_v46  ;;  %5378 = vmatpush3.bf16.msra.mxu1 %v5377_v38 }
 0x5b9   : > { %4990 = vmatprep.subr.bf16.mxu0 %v5841_v29  ;;  %5379 = vmatprep.subr.bf16.mxu1 %v5843_v5 }
 0x5bc   : > { %5381 = vmatpush3.bf16.msra.mxu1 %v5380_v41 }
 0x5bd   : > { %5382 = vmatprep.subr.bf16.mxu1 %v5843_v5 }
 0x5c0   : > { %5384 = vmatpush3.bf16.msra.mxu1 %v5383_v13 }
 0x5c1   : > { %5074 = vmatprep.subr.mxu1 %v5841_v29 }
 0x5c4   : > { %5075 = vmatpush3.msra.mxu1 %v3987_v14 }
 0x5c5   : > { %5385 = vmatprep.subr.bf16.mxu1 %v5843_v5 }
 0x679   : > { %v3299_v20 = vpop.f32.mrb[12].mxu0  ;;  %v3522_v22 = vpop.f32.mrb[32].mxu1 }
 0x67a   : > { %v3527_v51 = vmax.f32 %v3299_v20, %v3522_v22  ;;  %v3301_v23 = vpop.f32.mrb[13].mxu0  ;;  %v3524_v2 = vpop.f32.mrb[33].mxu1 }
 0x67b   : > { %v3528_v25 = vmax.f32 %v3301_v23, %v3524_v2 }
 0x67c   : > { %3531 = vrot.lane.b32.xlu0 %v3527_v51, %s5845_s27 }
 0x680   : > { %3533 = vrot.lane.b32.xlu0 %v3528_v25, %s5845_s27  ;;  %v4068_v25 = vld [vmem:[%s7574_s13 + $0x10] sm:$0xff]  ;;  %s519_s27 = scalar_lea.vmem [#allocation2], %s518_s18 }
 0x681   : > { %v5389_v27 = vpack.c.bf16 %v4069_v26, %v4068_v25  ;;  %s4187_s26 = sshll.u32 %s519_s27, 4  ;;  %s7520_s26 = int_to_ptr.vmem [resolvable:$true] %s4187_s26 }
 0x682   : > { %s5776_s24 = scalar_lea.vmem %s7520_s26, 16 }
 0x683   : > { %p5777_p11 = scmp.ne.s32.totalorder %s7520_s26, %s5776_s24 }
 0x685   : > { %p5778_p12 = pnand %p5777_p11, %p5970_p5 }
 0x687   : > { %p5779_p13 = pneg %p5778_p12 }
 0x6ee   : > { %v3532_v42 = vpop.permute.xlu0 %3531 }
 0x6f2   : > { %v3534_v43 = vpop.permute.xlu0 %3533 }
 0x6f3   : > { %v3536_v44 = vsel %vm3535_vm0, %v3532_v42, %v3534_v43 }
 0x6f4   : > { %v3538_v45 = vadd.f32 %v3536_v44, %v3527_v51  ;;  %v5386_v51 = vpack.c.bf16 %v4067_v17, %v4066_v16 }
 0x6f6   : > { %v7350_v48 = vpack.c.bf16 %v3538_v45, %v3538_v45 }
 0x6f8   : > { %4987 = vmatmul.mubr.msk.bf16.vlgmr.msra.gmra.mrb[16].mxu0 %vm3581_vm1, %v7350_v48  ;;  %v3637_v55 = vshrl.u32 %v7350_v48, 16  ;;  %v3725_v62 = vrot.slane %v7350_v48, 1  ;;  %v3897_v10 = vrot.slane %v7350_v48, 2 }
 0x6f9   : > { %4991 = vmatpush3.bf16.msra.mxu0 %v5752_v47  ;;  %5000 = vmatprep.mubr.msk.bf16.mxu0 %vm5844_vm11, %v5841_v29 }
 0x6fa   : > { %4992 = vmatprep.subr.bf16.mxu0 %v5841_v29  ;;  %v3811_v6 = vrot.slane %v3637_v55, 1 }
 0x6fd   : > { %4993 = vmatpush3.bf16.msra.mxu0 %v5753_v49 }
 0x6fe   : > { %4994 = vmatprep.subr.bf16.mxu0 %v5841_v29 }
 0x701   : > { %4995 = vmatpush3.bf16.msra.mxu0 %v5754_v50 }
 0x702   : > { %4996 = vmatprep.subr.bf16.mxu0 %v5841_v29 }
 0x705   : > { %4997 = vmatpush3.bf16.msra.mxu0 %v5755_v52 }
 0x706   : > { %4998 = vmatprep.subr.bf16.mxu0 %v5841_v29 }
 0x709   : > { %4999 = vmatpush3.bf16.msra.mxu0 %v5756_v53 }
 0x70a   : > { %5004 = vmatprep.subr.bf16.mxu0 %v5841_v29 }
 0x70c   : > { %5001 = vmatmul.mubr.msk.bf16.vlgmr.msra.gmra.mrb[16].mxu0 %vm3581_vm1, %v3637_v55 }
 0x70d   : > { %5005 = vmatpush3.bf16.msra.mxu0 %v5757_v54  ;;  %5014 = vmatprep.mubr.msk.bf16.mxu0 %vm5844_vm11, %v5841_v29 }
 0x70e   : > { %5006 = vmatprep.subr.bf16.mxu0 %v5841_v29 }
 0x711   : > { %5007 = vmatpush3.bf16.msra.mxu0 %v5758_v57 }
 0x712   : > { %5008 = vmatprep.subr.bf16.mxu0 %v5841_v29 }
 0x715   : > { %5009 = vmatpush3.bf16.msra.mxu0 %v5759_v58 }
 0x716   : > { %5010 = vmatprep.subr.bf16.mxu0 %v5841_v29 }
 0x719   : > { %5011 = vmatpush3.bf16.msra.mxu0 %v5760_v59 }
 0x71a   : > { %5012 = vmatprep.subr.bf16.mxu0 %v5841_v29 }
 0x71d   : > { %5013 = vmatpush3.bf16.msra.mxu0 %v5761_v60 }
 0x71e   : > { %5018 = vmatprep.subr.bf16.mxu0 %v5841_v29 }
 0x720   : > { %5015 = vmatmul.mubr.msk.bf16.vlgmr.msra.gmra.mrb[16].mxu0 %vm3581_vm1, %v3725_v62 }
 0x721   : > { %5019 = vmatpush3.bf16.msra.mxu0 %v5762_v61  ;;  %5028 = vmatprep.mubr.msk.bf16.mxu0 %vm5844_vm11, %v5841_v29 }
 0x722   : > { %5020 = vmatprep.subr.bf16.mxu0 %v5841_v29 }
 0x725   : > { %5021 = vmatpush3.bf16.msra.mxu0 %v5763_v63 }
 0x726   : > { %5022 = vmatprep.subr.bf16.mxu0 %v5841_v29 }
 0x729   : > { %5023 = vmatpush3.bf16.msra.mxu0 %v5764_v0 }
 0x72a   : > { %5024 = vmatprep.subr.bf16.mxu0 %v5841_v29 }
 0x72d   : > { %5025 = vmatpush3.bf16.msra.mxu0 %v5765_v1 }
 0x72e   : > { %5026 = vmatprep.subr.bf16.mxu0 %v5841_v29 }
 0x731   : > { %5027 = vmatpush3.bf16.msra.mxu0 %v5766_v3 }
 0x732   : > { %5032 = vmatprep.subr.bf16.mxu0 %v5841_v29 }
 0x734   : > { %5029 = vmatmul.mubr.msk.bf16.vlgmr.msra.gmra.mrb[16].mxu0 %vm3581_vm1, %v3811_v6 }
 0x735   : > { %5033 = vmatpush3.bf16.msra.mxu0 %v5767_v4  ;;  %5042 = vmatprep.mubr.msk.bf16.mxu0 %vm5844_vm11, %v5841_v29 }
 0x736   : > { %5034 = vmatprep.subr.bf16.mxu0 %v5841_v29 }
 0x739   : > { %5035 = vmatpush3.bf16.msra.mxu0 %v5768_v7 }
 0x73a   : > { %5036 = vmatprep.subr.bf16.mxu0 %v5841_v29 }
 0x73d   : > { %5037 = vmatpush3.bf16.msra.mxu0 %v5769_v8 }
 0x73e   : > { %5038 = vmatprep.subr.bf16.mxu0 %v5841_v29 }
 0x741   : > { %5039 = vmatpush3.bf16.msra.mxu0 %v5770_v9 }
 0x742   : > { %5040 = vmatprep.subr.bf16.mxu0 %v5841_v29 }
 0x745   : > { %5041 = vmatpush3.bf16.msra.mxu0 %v5771_v56 }
 0x748   : > { %5043 = vmatmul.mubr.msk.bf16.vlgmr.msra.gmra.mrb[16].mxu0 %vm3581_vm1, %v3897_v10 }
 0x81b   : > { %v3965_v18 = vpop.f32.mrb[16].mxu0 }
 0x81c   : > { %v5416_v46 = vadd.f32 %v3965_v18, %v3539_v15  ;;  %v5044_v20 = vpop.f32.mrb[17].mxu0 }
 0x81d   : > { %v3968_v22 = vpop.f32.mrb[18].mxu0 }
 0x81e   : > { %v3972_v23 = vmax.f32 %v5416_v46, 0.0  ;;  %v5045_v2 = vpop.f32.mrb[19].mxu0 }
 0x820   : > { %5077 = vmatmul.mubr.msk.f32.vlgmr.msra.gmra.mrb[34].mxu1 %vm3989_vm2, %v3972_v23 }
 0x821   : > { %5387 = vmatpush3.bf16.msra.mxu1 %v5386_v51  ;;  %5101 = vmatprep.mubr.msk.f32.mxu1 %vm5844_vm11, %v5841_v29 }
 0x822   : > { %5388 = vmatprep.subr.bf16.mxu1 %v5843_v5 }
 0x825   : > { %5390 = vmatpush3.bf16.msra.mxu1 %v5389_v27 }
 0x826   : > { %5391 = vmatprep.subr.bf16.mxu1 %v5843_v5 }
 0x829   : > { %5393 = vmatpush3.bf16.msra.mxu1 %v5392_v31 }
 0x82a   : > { %5394 = vmatprep.subr.bf16.mxu1 %v5843_v5 }
 0x82d   : > { %5396 = vmatpush3.bf16.msra.mxu1 %v5395_v24 }
 0x82e   : > { %5397 = vmatprep.subr.bf16.mxu1 %v5843_v5  ;;  %v3988_v5 = vld [vmem:[%s7573_s12] sm:$0x1] }
 0x831   : > { %5399 = vmatpush3.bf16.msra.mxu1 %v5398_v34 }
 0x832   : > { %5099 = vmatprep.subr.mxu1 %v5841_v29  ;;  %v4077_v29 = vld [vmem:[%s7575_s14] sm:$0x1] }
 0x835   : > { %5100 = vmatpush3.msk.msra.mxu1 %vm1296_vm5, %v4076_v35 }
 0x8f3   : > { %v4059_v36 = vpop.f32.mrb[34].mxu1 }
 0x8f4   : > { %v4060_v37 = vadd.f32 %v4059_v36, %v3988_v5  ;;  %v5078_v38 = vpop.f32.mrb[35].mxu1 }
 0x8f6   : > { %v4063_v39 = vmax.f32 %v4060_v37, 0.0 }
 0x8f8   : > { %4065 = vst.msk [vmem:[%s527_s0] sm:$0x1] %vm4064_vm3, %v4063_v39  ;;  %5102 = vmatmul.mubr.msk.f32.vlgmr.msra.gmra.mrb[36].mxu1 %vm1784_vm12, %v4063_v39  ;;  %s5780_s0 = sshll.u32 %s5846_s25, 4  ;;  %s5781_s0 = int_to_ptr.vmem [resolvable:$false] %s5780_s0 }
 0x8f9   : > { %s5782_s23 = scalar_lea.vmem %s5781_s0, 32  ;;  %p5783_p0 = scmp.lt.s32.totalorder %s7520_s26, %s5781_s0 }
 0x8fa   : > { %p5784_p1 = scmp.lt.s32.totalorder %s5782_s23, %s5776_s24 }
 0x8fc   : > { %p5785_p2 = por %p5784_p1, %p5783_p0 }
 0x8fe   : > { %p5786_p3 = pnand %p5785_p2, %p5779_p13 }
 0x9cb   : > { %v4150_v40 = vpop.f32.mrb[36].mxu1 }
 0x9cc   : > { %v4151_v41 = vadd.f32 %v4150_v40, %v4077_v29  ;;  %v5103_v42 = vpop.f32.mrb[37].mxu1 }
 0x9ce   : > { %v4155_v43 = vsel %vm4154_vm4, %v4151_v41, -inf }
 0x9cf   : > { %4156 = vmax.xlane.f32.xlu1 %v4155_v43 }
 0xa5c   : > { %v4157_v44 = vpop.xlane.xlu1 %4156 }
 0xa5d   : > { %v4158_v45 = vsub.f32 %v4151_v41, %v4157_v44 }
 0xa5f   : > { %v4159_v47 = vmul.f32 1.442695, %v4158_v45 }
 0xa61   : > { %5772 = vpow2.f32 %v4159_v47 }
 0xa6b   : > { %v5773_v48 = vpop.eup %5772 }
 0xa6c   : > { %v4161_v49 = vsel %vm4154_vm4, %v5773_v48, 0.0 }
 0xa6d   : > { %4162 = vadd.xlane.f32.xlu1 %v4161_v49 }
 0xafa   : > { %v4163_v50 = vpop.xlane.xlu1 %4162 }
 0xafb   : > { %5774 = vlog2.f32 %v4163_v50 }
 0xb05   : > { %v5775_v52 = vpop.eup %5774 }
 0xb06   : > { %v4165_v53 = vmul.f32 0.6931472, %v5775_v52 }
 0xb08   : > { %v4166_v54 = vsub.f32 %v4158_v45, %v4165_v53 }
 0xb0a   : > { %4167 = vst.msk [vmem:[%s519_s27] sm:$0x1] %vm4154_vm4, %v4166_v54 }
 0xb0b   : > { %5789 = shalt.err (!%p5786_p3)
}
 0xb0c   : > { %s5790_s30 = scalar_lea.hbm %s7518_s21, 16  ;;  %s5794_s27 = scalar_lea.hbm %s7602_s17, 32 }
 0xb0d   : > { %p5791_p4 = scmp.ne.s32.totalorder %s7518_s21, %s5790_s30  ;;  %p5795_p9 = scmp.lt.u32.totalorder %s7518_s21, %s7602_s17 }
 0xb0e   : > { %p5796_p10 = scmp.lt.u32.totalorder %s5794_s27, %s5790_s30  ;;  %p5798_p12 = scmp.lt.u32.totalorder %s5790_s30, %s7518_s21 }
 0xb0f   : > { %p5792_p7 = pnand %p5791_p4, %p5970_p5 }
 0xb10   : > { %p5797_p11 = por %p5796_p10, %p5795_p9 }
 0xb11   : > { %p5793_p8 = pneg %p5792_p7 }
 0xb12   : > { %p5799_p13 = por %p5798_p12, %p5797_p11 }
 0xb14   : > { %p5800_p0 = pnand %p5799_p13, %p5793_p8 }
 0xb16   : > { %5803 = shalt.err (!%p5800_p0)
}
 0xb17   : > { %5497 = dma.vmem_to_hbm [thread:$0]  (%p5970_p5), %s7520_s26, 16, %s7518_s21, %s4172_s16  }
 0xb18 PF: > { %s7603_s24 = sld [smem:[#allocation7_spill]]  ;;  %s7604_s25 = sld [smem:[#allocation5_spill]] }
 0xb1e   : > { %p5503_p1 = scmp.ge.s32.totalorder %s7603_s24, 2  ;;  %s4205_s23 = sand.u32 1, %s7604_s25  }
 0xb1f   : > { %s4206_s18 = scalar_lea.sflag [#allocation3], %s4205_s23 }
 0xb20   : > { %p5500_p2 = pnand %p5503_p1, %p5974_p6 }
 0xb22   : > { %5821 = dma.done.wait (!%p5500_p2), %s4206_s18, 16  }
 0xb23   : > { %5823 = vsyncadd (!%p5500_p2), %s4206_s18, 4294967280  ;;  %s7606_s24 = sld [smem:[#allocation8_spill]]  ;;  %s7607_s30 = sld [smem:[#allocation6_spill]] }
 0xb24   : > { %s7608_s23 = sld [smem:[#allocation9_spill]]  ;;  %s7609_s21 = smov %s5830_s22 }
 0xb29   : > { %p27_p3 = scmp.ge.s32.totalorder %s7606_s24, 4   ;;  %s7610_s22 = smov %s7607_s30 }
 0xb2b   :  { %29 = sbr.rel (!%p27_p3) target bundleno = 6 (0x6), region = 143 }
 0xb32   :  { %4210 = vsyncpa [#allocation3], 1 }
 0xb33   :  { %4212 = vsyncpa [#allocation3 + $0x1], 1 }

</bundles_post_ra>
